<compile_context>
chip_gen: v7x
topology: tpu7x:2x2x1
jax: 0.10.0
libtpu: 0.0.40
codegen_flags: <defaults>
</compile_context>

<pallas_src>
import math

import jax
import jax.numpy as jnp
import numpy as np
from jax.experimental import pallas as pl
from jax.experimental.pallas import tpu as pltpu

EPS = 1e-5
VMEM_LIMIT_BYTES = 32 * 1024 * 1024   # ample for the per-image blocks; safe on v7x (64 MiB phys)

# Matmul-operand dtype.  bf16 halves operand HBM+VMEM bytes and matches the MXU's
# native dtype on v5e/v6e/v7x; accumulation / BN stats / epilogues stay f32.
# Set to jnp.float32 for bit-exact parity experiments.
CONV_OPERAND_DTYPE = jnp.bfloat16


def _round_up(n, m):
    return ((n + m - 1) // m) * m


def _rotate_lanes(x, d):
    """y[:, i] = x[:, (i + d) % L] for a static integer offset d (lane rotation)."""
    L = x.shape[-1]
    d = d % L
    if d == 0:
        return x
    return jnp.concatenate([x[:, d:], x[:, :d]], axis=-1)


# ----------------------------------------------------------------------------- kernels
def _make_conv_kernel(offsets, fuse_bn_relu, op_dtype):
    """Conv-as-shifted-matmuls kernel over one image's flattened padded grid.

    x_ref: (1, C, Limg) operand-dtype slab, w_ref: (T, O, C) taps, mask: (1, Limg)
    marks valid output positions (for BN stats).  Optionally fuses an input-side
    affine+ReLU (BN1) with masking so padding positions stay exactly zero.
    Outputs: y (1, O, Limg) and packed BN partials (1, O, 2) = [sum, sum-of-sq].
    """
    offsets = tuple(int(d) for d in offsets)

    def body(xop, w_ref, mask, y_ref, st_ref):
        acc = None
        for t, d in enumerate(offsets):
            xt = _rotate_lanes(xop, d)
            part = jnp.dot(w_ref[t], xt, preferred_element_type=jnp.float32)
            acc = part if acc is None else acc + part
        y_ref[0] = acc.astype(y_ref.dtype)
        s = jnp.sum(acc * mask, axis=-1, keepdims=True)        # (O, 1)
        q = jnp.sum(acc * acc * mask, axis=-1, keepdims=True)  # (O, 1)
        st_ref[0] = jnp.concatenate([s, q], axis=-1)           # packed (O, 2)

    if fuse_bn_relu:
        def kernel(x_ref, w_ref, scale_ref, shift_ref, mask_ref, y_ref, st_ref):
            mask = mask_ref[...]                               # (1, Limg) f32
            xin = x_ref[0].astype(jnp.float32)                 # (C, Limg)
            xin = jnp.maximum(xin * scale_ref[...] + shift_ref[...], 0.0) * mask
            body(xin.astype(op_dtype), w_ref, mask, y_ref, st_ref)
    else:
        def kernel(x_ref, w_ref, mask_ref, y_ref, st_ref):
            body(x_ref[0], w_ref, mask_ref[...], y_ref, st_ref)

    return kernel


def residual_bn_relu_kernel(y_ref, s_ref, b_ref, r_ref, rs_ref, rb_ref, o_ref):
    """relu( bn2(conv2) + bn_sc(shortcut) ), lane-dense over one image's grid."""
    y = y_ref[0].astype(jnp.float32)
    r = r_ref[0].astype(jnp.float32)
    main = y * s_ref[...] + b_ref[...]
    sc = r * rs_ref[...] + rb_ref[...]
    o_ref[0] = jnp.maximum(main + sc, 0.0)


# ----------------------------------------------------------------------------- pallas wrappers
def conv_taps(x3, w_taps, offsets, mask, *, in_scale=None, in_shift=None,
              out_dtype=jnp.float32):
    """Run the shifted-matmul conv kernel over grid=(N,) images (parallel)."""
    N, C, Limg = x3.shape
    T, O, C2 = w_taps.shape
    assert C2 == C and len(offsets) == T and Limg % 128 == 0

    fuse = in_scale is not None
    kernel = _make_conv_kernel(offsets, fuse, x3.dtype)

    in_specs = [
        pl.BlockSpec((1, C, Limg), lambda n: (n, 0, 0)),
        pl.BlockSpec((T, O, C), lambda n: (0, 0, 0)),
    ]
    args = [x3, w_taps]
    if fuse:
        in_specs += [pl.BlockSpec((C, 1), lambda n: (0, 0)),
                     pl.BlockSpec((C, 1), lambda n: (0, 0))]
        args += [in_scale, in_shift]
    in_specs += [pl.BlockSpec((1, Limg), lambda n: (0, 0))]
    args += [mask]

    y, stats = pl.pallas_call(
        kernel,
        out_shape=(jax.ShapeDtypeStruct((N, O, Limg), out_dtype),
                   jax.ShapeDtypeStruct((N, O, 2), jnp.float32)),
        grid_spec=pltpu.PrefetchScalarGridSpec(
            num_scalar_prefetch=0,
            grid=(N,),
            in_specs=in_specs,
            out_specs=[pl.BlockSpec((1, O, Limg), lambda n: (n, 0, 0)),
                       pl.BlockSpec((1, O, 2), lambda n: (n, 0, 0))],
        ),
        compiler_params=pltpu.CompilerParams(
            dimension_semantics=("parallel",),
            vmem_limit_bytes=VMEM_LIMIT_BYTES,
        ),
    )(*args)
    return y, stats


def fused_residual(y2g, s2, b2, yscg, ssc, bsc):
    """relu(y2*s2+b2 + ysc*ssc+bsc) on the lane-dense per-image grid layout."""
    N, P, Limg = y2g.shape
    return pl.pallas_call(
        residual_bn_relu_kernel,
        out_shape=jax.ShapeDtypeStruct((N, P, Limg), jnp.float32),
        grid_spec=pltpu.PrefetchScalarGridSpec(
            num_scalar_prefetch=0,
            grid=(N,),
            in_specs=[
                pl.BlockSpec((1, P, Limg), lambda n: (n, 0, 0)),
                pl.BlockSpec((P, 1), lambda n: (0, 0)),
                pl.BlockSpec((P, 1), lambda n: (0, 0)),
                pl.BlockSpec((1, P, Limg), lambda n: (n, 0, 0)),
                pl.BlockSpec((P, 1), lambda n: (0, 0)),
                pl.BlockSpec((P, 1), lambda n: (0, 0)),
            ],
            out_specs=pl.BlockSpec((1, P, Limg), lambda n: (n, 0, 0)),
        ),
        compiler_params=pltpu.CompilerParams(
            dimension_semantics=("parallel",),
            vmem_limit_bytes=VMEM_LIMIT_BYTES,
        ),
    )(y2g, s2, b2, yscg, ssc, bsc)


# ----------------------------------------------------------------------------- glue helpers
def _flatten_padded(x_nchw, pad, Limg):
    """(N,C,H,W) -> (N,C,Limg) per-image zero-padded, row-major flattened grid."""
    N, C, H, W = x_nchw.shape
    Hp, Wp = H + 2 * pad, W + 2 * pad
    xp = jnp.pad(x_nchw, ((0, 0), (0, 0), (pad, pad), (pad, pad)))
    xf = xp.reshape(N, C, Hp * Wp)
    if Limg != Hp * Wp:
        xf = jnp.pad(xf, ((0, 0), (0, 0), (0, Limg - Hp * Wp)))
    return xf


def _valid_mask(Hp, Wp, Limg, Ho, Wo, stride):
    """(1, Limg) f32 mask of grid positions holding true conv outputs."""
    m = np.zeros((Hp, Wp), np.float32)
    m[0:stride * Ho:stride, 0:stride * Wo:stride] = 1.0
    flat = np.zeros((1, Limg), np.float32)
    flat[0, :Hp * Wp] = m.reshape(-1)
    return jnp.asarray(flat)


def _weight_taps(w_oihw):
    """(O,I,KH,KW) -> (KH*KW, O, I) per-tap matmul weights (row-major taps)."""
    O, I, KH, KW = w_oihw.shape
    return jnp.transpose(w_oihw, (2, 3, 0, 1)).reshape(KH * KW, O, I).astype(CONV_OPERAND_DTYPE)


def finalize_bn(stats, count, gamma, beta, eps=EPS):
    """Per-image partials (N,O,2) -> batch mean/var -> folded (scale, shift) as (O,1)."""
    tot = jnp.sum(stats, axis=0)                                    # (O, 2)
    mean = tot[:, 0] / count
    # TODO(synk): E[x^2]-E[x]^2 cancels at very large M; switch to a Welford-style
    # combine for production batch*H*W.  Clamp guards the eps-rsqrt meanwhile.
    var = jnp.maximum(tot[:, 1] / count - mean * mean, 0.0)
    scale = gamma / jnp.sqrt(var + eps)
    shift = beta - mean * scale
    return scale.reshape(-1, 1), shift.reshape(-1, 1)


def _extract(y_grid, meta):
    """Pull the true (N,O,Ho,Wo) conv output out of a flattened grid slab."""
    Hp, Wp, G, Limg, Ho, Wo, stride = meta
    N, O = y_grid.shape[0], y_grid.shape[1]
    g = y_grid[:, :, :G].reshape(N, O, Hp, Wp)
    return g[:, :, ::stride, ::stride][:, :, :Ho, :Wo]


def _to_grid(x_dense, Hp, Wp, Limg):
    """Place a dense (N,C,h,w) slab at the top-left of an (Hp,Wp) grid, flattened."""
    N, C, h, w = x_dense.shape
    xp = jnp.pad(x_dense, ((0, 0), (0, 0), (0, Hp - h), (0, Wp - w)))
    xf = xp.reshape(N, C, Hp * Wp)
    if Limg != Hp * Wp:
        xf = jnp.pad(xf, ((0, 0), (0, 0), (0, Limg - Hp * Wp)))
    return xf.astype(jnp.float32)


def _conv_grid(x_nchw, w_oihw, stride, padding, out_dtype):
    """General conv (any stride/kernel): pad+flatten, run kernel, return grid y+stats."""
    N, C, H, W = x_nchw.shape
    O, I, KH, KW = w_oihw.shape
    Hp, Wp = H + 2 * padding, W + 2 * padding
    Ho = (Hp - KH) // stride + 1
    Wo = (Wp - KW) // stride + 1
    G = Hp * Wp
    Limg = _round_up(G, 128)
    xflat = _flatten_padded(x_nchw, padding, Limg).astype(CONV_OPERAND_DTYPE)
    mask = _valid_mask(Hp, Wp, Limg, Ho, Wo, stride)
    offs = tuple(kh * Wp + kw for kh in range(KH) for kw in range(KW))
    y, st = conv_taps(xflat, _weight_taps(w_oihw), offs, mask, out_dtype=out_dtype)
    return y, st, (Hp, Wp, G, Limg, Ho, Wo, stride)


# ----------------------------------------------------------------------------- BasicBlock
def init_basic_block_params(key, in_planes, planes, kernel_size=3, stride=1):
    def custom_conv_weight(k, in_c, out_c, ks):
        kh, kw = (ks, ks) if isinstance(ks, int) else ks
        k1, k2 = jax.random.split(k)
        std31 = math.sqrt(2.0 / (out_c * kh * 1))   # kaiming_normal_, fan_out, relu
        std13 = math.sqrt(2.0 / (out_c * 1 * kw))
        k3x1 = jax.random.normal(k1, (out_c, in_c, kh, 1), jnp.float32) * std31
        k1x3 = jax.random.normal(k2, (out_c, in_c, 1, kw), jnp.float32) * std13
        return k3x1 * k1x3                           # combined kernel (O, I, kh, kw)

    k1, k2, k3 = jax.random.split(key, 3)
    params = {
        "stride": stride,
        "conv1_w": custom_conv_weight(k1, in_planes, planes, kernel_size),
        "conv2_w": custom_conv_weight(k2, planes, planes, kernel_size),
        "bn1_gamma": jnp.ones((planes,), jnp.float32),
        "bn1_beta": jnp.zeros((planes,), jnp.float32),
        "bn2_gamma": jnp.ones((planes,), jnp.float32),
        "bn2_beta": jnp.zeros((planes,), jnp.float32),
        "sc_w": None,
    }
    if stride != 1 or in_planes != planes:
        params["sc_w"] = custom_conv_weight(k3, in_planes, planes, 1)
        params["sc_gamma"] = jnp.ones((planes,), jnp.float32)
        params["sc_beta"] = jnp.zeros((planes,), jnp.float32)
    return params


def _forward_fused_grid(x, params):
    """Fast path (stride=1, 3x3, pad=1): all stages share one per-image grid layout."""
    N, Cin, H, W = x.shape
    w1, w2 = params["conv1_w"], params["conv2_w"]
    P, _, KH, KW = w1.shape
    pad = 1
    Hp, Wp = H + 2 * pad, W + 2 * pad
    G = Hp * Wp
    Limg = _round_up(G, 128)

    xflat_f32 = _flatten_padded(x, pad, Limg)             # (N, Cin, Limg) f32
    xflat = xflat_f32.astype(CONV_OPERAND_DTYPE)
    mask = _valid_mask(Hp, Wp, Limg, H, W, 1)
    count = N * H * W

    # conv1 (+ BN1 partial stats in the kernel epilogue)
    offs1 = tuple(kh * Wp + kw for kh in range(KH) for kw in range(KW))
    y1g, st1 = conv_taps(xflat, _weight_taps(w1), offs1, mask,
                         out_dtype=CONV_OPERAND_DTYPE)
    s1, b1 = finalize_bn(st1, count, params["bn1_gamma"], params["bn1_beta"])

    # conv2 with BN1-apply + ReLU + padding-mask fused into the kernel (no a1 HBM pass)
    offs2 = tuple((kh - pad) * Wp + (kw - pad) for kh in range(KH) for kw in range(KW))
    y2g, st2 = conv_taps(y1g, _weight_taps(w2), offs2, mask,
                         in_scale=s1, in_shift=b1, out_dtype=jnp.float32)
    s2, b2 = finalize_bn(st2, count, params["bn2_gamma"], params["bn2_beta"])

    # shortcut (projection 1x1 as a single aligned tap on the same grid, or identity)
    if params["sc_w"] is not None:
        yscg, stsc = conv_taps(xflat, _weight_taps(params["sc_w"]),
                               (pad * (Wp + 1),), mask, out_dtype=jnp.float32)
        ssc, bsc = finalize_bn(stsc, count, params["sc_gamma"], params["sc_beta"])
    else:
        yscg = jnp.roll(xflat_f32, -pad * (Wp + 1), axis=-1)   # align pixels with outputs
        ssc = jnp.ones((Cin, 1), jnp.float32)
        bsc = jnp.zeros((Cin, 1), jnp.float32)

    # TODO(synk): BatchNorm running-stat updates (train-mode bookkeeping) not modeled.
    outg = fused_residual(y2g, s2, b2, yscg, ssc, bsc)
    return outg[:, :, :G].reshape(N, P, Hp, Wp)[:, :, :H, :W]


def _forward_general(x, params):
    """General path (stride!=1 or kernel!=3): same kernels, XLA re-grid glue between."""
    # TODO(synk): this path computes conv at every padded grid position (stride^2
    # extra MXU work) and re-grids activations through XLA between stages.
    N, Cin, H, W = x.shape
    stride = params["stride"]
    P = params["conv1_w"].shape[0]

    y1g, st1, m1 = _conv_grid(x, params["conv1_w"], stride, 1, jnp.float32)
    Ho, Wo = m1[4], m1[5]
    count = N * Ho * Wo
    s1, b1 = finalize_bn(st1, count, params["bn1_gamma"], params["bn1_beta"])
    a1 = jnp.maximum(_extract(y1g, m1) * s1.reshape(1, P, 1, 1)
                     + b1.reshape(1, P, 1, 1), 0.0)

    y2g, st2, m2 = _conv_grid(a1, params["conv2_w"], 1, 1, jnp.float32)
    s2, b2 = finalize_bn(st2, N * m2[4] * m2[5], params["bn2_gamma"], params["bn2_beta"])

    if params["sc_w"] is not None:
        yscg_raw, stsc, msc = _conv_grid(x, params["sc_w"], stride, 0, jnp.float32)
        ssc, bsc = finalize_bn(stsc, N * msc[4] * msc[5],
                               params["sc_gamma"], params["sc_beta"])
        ysc = _extract(yscg_raw, msc)
    else:
        ysc = x
        ssc = jnp.ones((Cin, 1), jnp.float32)
        bsc = jnp.zeros((Cin, 1), jnp.float32)

    yscg = _to_grid(ysc, m2[0], m2[1], m2[3])
    outg = fused_residual(y2g, s2, b2, yscg, ssc, bsc)
    return _extract(outg, m2)


def basic_block_forward(x_nchw, params):
    """BasicBlock forward (NCHW, PyTorch parity).  BatchNorm uses batch statistics."""
    x = x_nchw.astype(jnp.float32)
    KH, KW = params["conv1_w"].shape[2], params["conv1_w"].shape[3]
    fast = (params["stride"] == 1 and KH == 3 and KW == 3)
    return _forward_fused_grid(x, params) if fast else _forward_general(x, params)


# ----------------------------------------------------------------------------- pure-JAX reference
def ref_forward(x_nchw, params):
    def conv(x, w, stride, padding):
        return jax.lax.conv_general_dilated(
            x, w, (stride, stride), [(padding, padding)] * 2,
            dimension_numbers=("NCHW", "OIHW", "NCHW"),
            precision=jax.lax.Precision.HIGHEST)

    def bn(x, gamma, beta):
        mean = jnp.mean(x, axis=(0, 2, 3), keepdims=True)
        var = jnp.mean((x - mean) ** 2, axis=(0, 2, 3), keepdims=True)
        xh = (x - mean) / jnp.sqrt(var + EPS)
        return xh * gamma.reshape(1, -1, 1, 1) + beta.reshape(1, -1, 1, 1)

    stride = params["stride"]
    out = jax.nn.relu(bn(conv(x_nchw, params["conv1_w"], stride, 1),
                         params["bn1_gamma"], params["bn1_beta"]))
    out = bn(conv(out, params["conv2_w"], 1, 1), params["bn2_gamma"], params["bn2_beta"])
    if params["sc_w"] is not None:
        sc = bn(conv(x_nchw, params["sc_w"], stride, 0),
                params["sc_gamma"], params["sc_beta"])
    else:
        sc = x_nchw
    return jax.nn.relu(out + sc)


# ----------------------------------------------------------------------------- main
if __name__ == "__main__":
    key = jax.random.PRNGKey(0)
    kx, kp = jax.random.split(key)

    in_planes, planes, stride = 4, 8, 1          # in_planes != planes -> projection shortcut
    x = jax.random.normal(kx, (2, in_planes, 16, 16), jnp.float32)   # NCHW, like PyTorch
    params = init_basic_block_params(kp, in_planes, planes, kernel_size=3, stride=stride)

    fwd = jax.jit(lambda inp: basic_block_forward(inp, params))
    out = jax.block_until_ready(fwd(x))
    assert out.shape == (2, planes, 16, 16), out.shape

    ref = ref_forward(x, params)
    # Tolerance covers bf16 matmul operands (f32 accumulation / stats / epilogues).
    np.testing.assert_allclose(np.asarray(out), np.asarray(ref), rtol=5e-2, atol=5e-2)

    print("KERNEL_OK")
</pallas_src>

<mosaic_0001>
module attributes {stable_mosaic.version = 11 : i64} {
  func.func @kernel(%arg0: i32, %arg1: memref<1x8x384xbf16, #tpu.memory_space<vmem>>, %arg2: memref<9x8x8xbf16, #tpu.memory_space<vmem>>, %arg3: memref<8x1xf32, #tpu.memory_space<vmem>>, %arg4: memref<8x1xf32, #tpu.memory_space<vmem>>, %arg5: memref<1x384xf32, #tpu.memory_space<vmem>>, %arg6: memref<1x8x384xf32, #tpu.memory_space<vmem>>, %arg7: memref<1x8x2xf32, #tpu.memory_space<vmem>>) attributes {dimension_semantics = [#tpu.dimension_semantics<parallel>], iteration_bounds = array<i64: 2>, scalar_prefetch = 0 : i64, scratch_operands = 0 : i64, tpu.core_type = #tpu.core_type<tc>, window_params = [{transform_indices = @transform_0, window_bounds = array<i64: 1, 8, 384>}, {pipeline_mode = #tpu.pipeline_mode<synchronous>, transform_indices = @transform_1, window_bounds = array<i64: 9, 8, 8>}, {pipeline_mode = #tpu.pipeline_mode<synchronous>, transform_indices = @transform_2, window_bounds = array<i64: 8, 1>}, {pipeline_mode = #tpu.pipeline_mode<synchronous>, transform_indices = @transform_3, window_bounds = array<i64: 8, 1>}, {pipeline_mode = #tpu.pipeline_mode<synchronous>, transform_indices = @transform_4, window_bounds = array<i64: 1, 384>}, {transform_indices = @transform_5, window_bounds = array<i64: 1, 8, 384>}, {transform_indices = @transform_6, window_bounds = array<i64: 1, 8, 2>}]} {
    %c0 = arith.constant 0 : index
    %c0_0 = arith.constant 0 : index
    %0 = vector.load %arg5[%c0, %c0_0] : memref<1x384xf32, #tpu.memory_space<vmem>>, vector<1x384xf32>
    %c0_1 = arith.constant 0 : index
    %c0_2 = arith.constant 0 : index
    %c0_3 = arith.constant 0 : index
    %1 = vector.load %arg1[%c0_1, %c0_2, %c0_3] : memref<1x8x384xbf16, #tpu.memory_space<vmem>>, vector<1x8x384xbf16>
    %2 = vector.shape_cast %1 : vector<1x8x384xbf16> to vector<8x384xbf16>
    %3 = arith.extf %2 : vector<8x384xbf16> to vector<8x384xf32>
    %c0_4 = arith.constant 0 : index
    %c0_5 = arith.constant 0 : index
    %4 = vector.load %arg3[%c0_4, %c0_5] : memref<8x1xf32, #tpu.memory_space<vmem>>, vector<8x1xf32>
    %5 = vector.broadcast %4 : vector<8x1xf32> to vector<8x384xf32>
    %6 = arith.mulf %3, %5 : vector<8x384xf32>
    %c0_6 = arith.constant 0 : index
    %c0_7 = arith.constant 0 : index
    %7 = vector.load %arg4[%c0_6, %c0_7] : memref<8x1xf32, #tpu.memory_space<vmem>>, vector<8x1xf32>
    %8 = vector.broadcast %7 : vector<8x1xf32> to vector<8x384xf32>
    %9 = arith.addf %6, %8 : vector<8x384xf32>
    %cst = arith.constant 0.000000e+00 : f32
    %10 = vector.broadcast %cst : f32 to vector<8x384xf32>
    %11 = arith.maximumf %9, %10 : vector<8x384xf32>
    %12 = vector.broadcast %0 : vector<1x384xf32> to vector<8x384xf32>
    %13 = arith.mulf %11, %12 : vector<8x384xf32>
    %14 = arith.truncf %13 : vector<8x384xf32> to vector<8x384xbf16>
    %15 = vector.extract_strided_slice %14 {offsets = [0, 365], sizes = [8, 19], strides = [1, 1]} : vector<8x384xbf16> to vector<8x19xbf16>
    %16 = vector.extract_strided_slice %14 {offsets = [0, 0], sizes = [8, 365], strides = [1, 1]} : vector<8x384xbf16> to vector<8x365xbf16>
    %17 = tpu.concatenate %15, %16 in 1 : vector<8x19xbf16>, vector<8x365xbf16> -> vector<8x384xbf16>
    %c0_8 = arith.constant 0 : index
    %c0_9 = arith.constant 0 : index
    %c0_10 = arith.constant 0 : index
    %18 = vector.load %arg2[%c0_8, %c0_9, %c0_10] : memref<9x8x8xbf16, #tpu.memory_space<vmem>>, vector<1x8x8xbf16>
    %19 = vector.shape_cast %18 : vector<1x8x8xbf16> to vector<8x8xbf16>
    %cst_11 = arith.constant dense<0.000000e+00> : vector<8x384xf32>
    %20 = tpu.matmul %19, %17, %cst_11 {dimension_numbers = #tpu.dot_dimension_numbers<[1], [0], [0], [1], [0, 0, 1, 1], [], []>} : vector<8x8xbf16>, vector<8x384xbf16>, vector<8x384xf32> -> vector<8x384xf32>
    %21 = vector.extract_strided_slice %14 {offsets = [0, 366], sizes = [8, 18], strides = [1, 1]} : vector<8x384xbf16> to vector<8x18xbf16>
    %22 = vector.extract_strided_slice %14 {offsets = [0, 0], sizes = [8, 366], strides = [1, 1]} : vector<8x384xbf16> to vector<8x366xbf16>
    %23 = tpu.concatenate %21, %22 in 1 : vector<8x18xbf16>, vector<8x366xbf16> -> vector<8x384xbf16>
    %c1 = arith.constant 1 : index
    %c0_12 = arith.constant 0 : index
    %c0_13 = arith.constant 0 : index
    %24 = vector.load %arg2[%c1, %c0_12, %c0_13] : memref<9x8x8xbf16, #tpu.memory_space<vmem>>, vector<1x8x8xbf16>
    %25 = vector.shape_cast %24 : vector<1x8x8xbf16> to vector<8x8xbf16>
    %cst_14 = arith.constant dense<0.000000e+00> : vector<8x384xf32>
    %26 = tpu.matmul %25, %23, %cst_14 {dimension_numbers = #tpu.dot_dimension_numbers<[1], [0], [0], [1], [0, 0, 1, 1], [], []>} : vector<8x8xbf16>, vector<8x384xbf16>, vector<8x384xf32> -> vector<8x384xf32>
    %27 = arith.addf %20, %26 : vector<8x384xf32>
    %28 = vector.extract_strided_slice %14 {offsets = [0, 367], sizes = [8, 17], strides = [1, 1]} : vector<8x384xbf16> to vector<8x17xbf16>
    %29 = vector.extract_strided_slice %14 {offsets = [0, 0], sizes = [8, 367], strides = [1, 1]} : vector<8x384xbf16> to vector<8x367xbf16>
    %30 = tpu.concatenate %28, %29 in 1 : vector<8x17xbf16>, vector<8x367xbf16> -> vector<8x384xbf16>
    %c2 = arith.constant 2 : index
    %c0_15 = arith.constant 0 : index
    %c0_16 = arith.constant 0 : index
    %31 = vector.load %arg2[%c2, %c0_15, %c0_16] : memref<9x8x8xbf16, #tpu.memory_space<vmem>>, vector<1x8x8xbf16>
    %32 = vector.shape_cast %31 : vector<1x8x8xbf16> to vector<8x8xbf16>
    %cst_17 = arith.constant dense<0.000000e+00> : vector<8x384xf32>
    %33 = tpu.matmul %32, %30, %cst_17 {dimension_numbers = #tpu.dot_dimension_numbers<[1], [0], [0], [1], [0, 0, 1, 1], [], []>} : vector<8x8xbf16>, vector<8x384xbf16>, vector<8x384xf32> -> vector<8x384xf32>
    %34 = arith.addf %27, %33 : vector<8x384xf32>
    %35 = vector.extract_strided_slice %14 {offsets = [0, 383], sizes = [8, 1], strides = [1, 1]} : vector<8x384xbf16> to vector<8x1xbf16>
    %36 = vector.extract_strided_slice %14 {offsets = [0, 0], sizes = [8, 383], strides = [1, 1]} : vector<8x384xbf16> to vector<8x383xbf16>
    %37 = tpu.concatenate %35, %36 in 1 : vector<8x1xbf16>, vector<8x383xbf16> -> vector<8x384xbf16>
    %c3 = arith.constant 3 : index
    %c0_18 = arith.constant 0 : index
    %c0_19 = arith.constant 0 : index
    %38 = vector.load %arg2[%c3, %c0_18, %c0_19] : memref<9x8x8xbf16, #tpu.memory_space<vmem>>, vector<1x8x8xbf16>
    %39 = vector.shape_cast %38 : vector<1x8x8xbf16> to vector<8x8xbf16>
    %cst_20 = arith.constant dense<0.000000e+00> : vector<8x384xf32>
    %40 = tpu.matmul %39, %37, %cst_20 {dimension_numbers = #tpu.dot_dimension_numbers<[1], [0], [0], [1], [0, 0, 1, 1], [], []>} : vector<8x8xbf16>, vector<8x384xbf16>, vector<8x384xf32> -> vector<8x384xf32>
    %41 = arith.addf %34, %40 : vector<8x384xf32>
    %c4 = arith.constant 4 : index
    %c0_21 = arith.constant 0 : index
    %c0_22 = arith.constant 0 : index
    %42 = vector.load %arg2[%c4, %c0_21, %c0_22] : memref<9x8x8xbf16, #tpu.memory_space<vmem>>, vector<1x8x8xbf16>
    %43 = vector.shape_cast %42 : vector<1x8x8xbf16> to vector<8x8xbf16>
    %cst_23 = arith.constant dense<0.000000e+00> : vector<8x384xf32>
    %44 = tpu.matmul %43, %14, %cst_23 {dimension_numbers = #tpu.dot_dimension_numbers<[1], [0], [0], [1], [0, 0, 1, 1], [], []>} : vector<8x8xbf16>, vector<8x384xbf16>, vector<8x384xf32> -> vector<8x384xf32>
    %45 = arith.addf %41, %44 : vector<8x384xf32>
    %46 = vector.extract_strided_slice %14 {offsets = [0, 1], sizes = [8, 383], strides = [1, 1]} : vector<8x384xbf16> to vector<8x383xbf16>
    %47 = vector.extract_strided_slice %14 {offsets = [0, 0], sizes = [8, 1], strides = [1, 1]} : vector<8x384xbf16> to vector<8x1xbf16>
    %48 = tpu.concatenate %46, %47 in 1 : vector<8x383xbf16>, vector<8x1xbf16> -> vector<8x384xbf16>
    %c5 = arith.constant 5 : index
    %c0_24 = arith.constant 0 : index
    %c0_25 = arith.constant 0 : index
    %49 = vector.load %arg2[%c5, %c0_24, %c0_25] : memref<9x8x8xbf16, #tpu.memory_space<vmem>>, vector<1x8x8xbf16>
    %50 = vector.shape_cast %49 : vector<1x8x8xbf16> to vector<8x8xbf16>
    %cst_26 = arith.constant dense<0.000000e+00> : vector<8x384xf32>
    %51 = tpu.matmul %50, %48, %cst_26 {dimension_numbers = #tpu.dot_dimension_numbers<[1], [0], [0], [1], [0, 0, 1, 1], [], []>} : vector<8x8xbf16>, vector<8x384xbf16>, vector<8x384xf32> -> vector<8x384xf32>
    %52 = arith.addf %45, %51 : vector<8x384xf32>
    %53 = vector.extract_strided_slice %14 {offsets = [0, 17], sizes = [8, 367], strides = [1, 1]} : vector<8x384xbf16> to vector<8x367xbf16>
    %54 = vector.extract_strided_slice %14 {offsets = [0, 0], sizes = [8, 17], strides = [1, 1]} : vector<8x384xbf16> to vector<8x17xbf16>
    %55 = tpu.concatenate %53, %54 in 1 : vector<8x367xbf16>, vector<8x17xbf16> -> vector<8x384xbf16>
    %c6 = arith.constant 6 : index
    %c0_27 = arith.constant 0 : index
    %c0_28 = arith.constant 0 : index
    %56 = vector.load %arg2[%c6, %c0_27, %c0_28] : memref<9x8x8xbf16, #tpu.memory_space<vmem>>, vector<1x8x8xbf16>
    %57 = vector.shape_cast %56 : vector<1x8x8xbf16> to vector<8x8xbf16>
    %cst_29 = arith.constant dense<0.000000e+00> : vector<8x384xf32>
    %58 = tpu.matmul %57, %55, %cst_29 {dimension_numbers = #tpu.dot_dimension_numbers<[1], [0], [0], [1], [0, 0, 1, 1], [], []>} : vector<8x8xbf16>, vector<8x384xbf16>, vector<8x384xf32> -> vector<8x384xf32>
    %59 = arith.addf %52, %58 : vector<8x384xf32>
    %60 = vector.extract_strided_slice %14 {offsets = [0, 18], sizes = [8, 366], strides = [1, 1]} : vector<8x384xbf16> to vector<8x366xbf16>
    %61 = vector.extract_strided_slice %14 {offsets = [0, 0], sizes = [8, 18], strides = [1, 1]} : vector<8x384xbf16> to vector<8x18xbf16>
    %62 = tpu.concatenate %60, %61 in 1 : vector<8x366xbf16>, vector<8x18xbf16> -> vector<8x384xbf16>
    %c7 = arith.constant 7 : index
    %c0_30 = arith.constant 0 : index
    %c0_31 = arith.constant 0 : index
    %63 = vector.load %arg2[%c7, %c0_30, %c0_31] : memref<9x8x8xbf16, #tpu.memory_space<vmem>>, vector<1x8x8xbf16>
    %64 = vector.shape_cast %63 : vector<1x8x8xbf16> to vector<8x8xbf16>
    %cst_32 = arith.constant dense<0.000000e+00> : vector<8x384xf32>
    %65 = tpu.matmul %64, %62, %cst_32 {dimension_numbers = #tpu.dot_dimension_numbers<[1], [0], [0], [1], [0, 0, 1, 1], [], []>} : vector<8x8xbf16>, vector<8x384xbf16>, vector<8x384xf32> -> vector<8x384xf32>
    %66 = arith.addf %59, %65 : vector<8x384xf32>
    %67 = vector.extract_strided_slice %14 {offsets = [0, 19], sizes = [8, 365], strides = [1, 1]} : vector<8x384xbf16> to vector<8x365xbf16>
    %68 = vector.extract_strided_slice %14 {offsets = [0, 0], sizes = [8, 19], strides = [1, 1]} : vector<8x384xbf16> to vector<8x19xbf16>
    %69 = tpu.concatenate %67, %68 in 1 : vector<8x365xbf16>, vector<8x19xbf16> -> vector<8x384xbf16>
    %c8 = arith.constant 8 : index
    %c0_33 = arith.constant 0 : index
    %c0_34 = arith.constant 0 : index
    %70 = vector.load %arg2[%c8, %c0_33, %c0_34] : memref<9x8x8xbf16, #tpu.memory_space<vmem>>, vector<1x8x8xbf16>
    %71 = vector.shape_cast %70 : vector<1x8x8xbf16> to vector<8x8xbf16>
    %cst_35 = arith.constant dense<0.000000e+00> : vector<8x384xf32>
    %72 = tpu.matmul %71, %69, %cst_35 {dimension_numbers = #tpu.dot_dimension_numbers<[1], [0], [0], [1], [0, 0, 1, 1], [], []>} : vector<8x8xbf16>, vector<8x384xbf16>, vector<8x384xf32> -> vector<8x384xf32>
    %73 = arith.addf %66, %72 : vector<8x384xf32>
    %c0_36 = arith.constant 0 : index
    %c0_37 = arith.constant 0 : index
    %c0_38 = arith.constant 0 : index
    %74 = vector.load %arg6[%c0_36, %c0_37, %c0_38] : memref<1x8x384xf32, #tpu.memory_space<vmem>>, vector<1x8x384xf32>
    %75 = vector.shape_cast %74 : vector<1x8x384xf32> to vector<8x384xf32>
    %76 = vector.shape_cast %73 : vector<8x384xf32> to vector<1x8x384xf32>
    tpu.vector_store %arg6[%c0_36, %c0_37, %c0_38], %76 {strides = array<i32>} : memref<1x8x384xf32, #tpu.memory_space<vmem>>, vector<1x8x384xf32>,
    %77 = vector.broadcast %0 : vector<1x384xf32> to vector<8x384xf32>
    %78 = arith.mulf %73, %77 : vector<8x384xf32>
    %cst_39 = arith.constant dense<0.000000e+00> : vector<8xf32>
    %79 = vector.multi_reduction <add>, %78, %cst_39 [1] : vector<8x384xf32> to vector<8xf32>
    %80 = vector.shape_cast %79 : vector<8xf32> to vector<8x1xf32>
    %81 = arith.mulf %73, %73 : vector<8x384xf32>
    %82 = vector.broadcast %0 : vector<1x384xf32> to vector<8x384xf32>
    %83 = arith.mulf %81, %82 : vector<8x384xf32>
    %cst_40 = arith.constant dense<0.000000e+00> : vector<8xf32>
    %84 = vector.multi_reduction <add>, %83, %cst_40 [1] : vector<8x384xf32> to vector<8xf32>
    %85 = vector.shape_cast %84 : vector<8xf32> to vector<8x1xf32>
    %86 = tpu.concatenate %80, %85 in 1 : vector<8x1xf32>, vector<8x1xf32> -> vector<8x2xf32>
    %c0_41 = arith.constant 0 : index
    %c0_42 = arith.constant 0 : index
    %c0_43 = arith.constant 0 : index
    %87 = vector.load %arg7[%c0_41, %c0_42, %c0_43] : memref<1x8x2xf32, #tpu.memory_space<vmem>>, vector<1x8x2xf32>
    %88 = vector.shape_cast %87 : vector<1x8x2xf32> to vector<8x2xf32>
    %89 = vector.shape_cast %86 : vector<8x2xf32> to vector<1x8x2xf32>
    tpu.vector_store %arg7[%c0_41, %c0_42, %c0_43], %89 {strides = array<i32>} : memref<1x8x2xf32, #tpu.memory_space<vmem>>, vector<1x8x2xf32>,
    return
  }
  func.func @transform_0(%arg0: i32) -> (i32, i32, i32) {
    %c0_i32 = arith.constant 0 : i32
    %c0_i32_0 = arith.constant 0 : i32
    %c0_i32_1 = arith.constant 0 : i32
    return %arg0, %c0_i32, %c0_i32_0 : i32, i32, i32
  }
  func.func @transform_1(%arg0: i32) -> (i32, i32, i32) {
    %c0_i32 = arith.constant 0 : i32
    %c0_i32_0 = arith.constant 0 : i32
    %c0_i32_1 = arith.constant 0 : i32
    %c0_i32_2 = arith.constant 0 : i32
    return %c0_i32, %c0_i32_0, %c0_i32_1 : i32, i32, i32
  }
  func.func @transform_2(%arg0: i32) -> (i32, i32) {
    %c0_i32 = arith.constant 0 : i32
    %c0_i32_0 = arith.constant 0 : i32
    %c0_i32_1 = arith.constant 0 : i32
    return %c0_i32, %c0_i32_0 : i32, i32
  }
  func.func @transform_3(%arg0: i32) -> (i32, i32) {
    %c0_i32 = arith.constant 0 : i32
    %c0_i32_0 = arith.constant 0 : i32
    %c0_i32_1 = arith.constant 0 : i32
    return %c0_i32, %c0_i32_0 : i32, i32
  }
  func.func @transform_4(%arg0: i32) -> (i32, i32) {
    %c0_i32 = arith.constant 0 : i32
    %c0_i32_0 = arith.constant 0 : i32
    %c0_i32_1 = arith.constant 0 : i32
    return %c0_i32, %c0_i32_0 : i32, i32
  }
  func.func @transform_5(%arg0: i32) -> (i32, i32, i32) {
    %c0_i32 = arith.constant 0 : i32
    %c0_i32_0 = arith.constant 0 : i32
    %c0_i32_1 = arith.constant 0 : i32
    return %arg0, %c0_i32, %c0_i32_0 : i32, i32, i32
  }
  func.func @transform_6(%arg0: i32) -> (i32, i32, i32) {
    %c0_i32 = arith.constant 0 : i32
    %c0_i32_0 = arith.constant 0 : i32
    %c0_i32_1 = arith.constant 0 : i32
    return %arg0, %c0_i32, %c0_i32_0 : i32, i32, i32
  }
}

module attributes {stable_mosaic.version = 11 : i64} {
  func.func @kernel(%arg0: i32, %arg1: memref<1x4x384xbf16, #tpu.memory_space<vmem>>, %arg2: memref<1x8x4xbf16, #tpu.memory_space<vmem>>, %arg3: memref<1x384xf32, #tpu.memory_space<vmem>>, %arg4: memref<1x8x384xf32, #tpu.memory_space<vmem>>, %arg5: memref<1x8x2xf32, #tpu.memory_space<vmem>>) attributes {dimension_semantics = [#tpu.dimension_semantics<parallel>], iteration_bounds = array<i64: 2>, scalar_prefetch = 0 : i64, scratch_operands = 0 : i64, tpu.core_type = #tpu.core_type<tc>, window_params = [{transform_indices = @transform_0, window_bounds = array<i64: 1, 4, 384>}, {pipeline_mode = #tpu.pipeline_mode<synchronous>, transform_indices = @transform_1, window_bounds = array<i64: 1, 8, 4>}, {pipeline_mode = #tpu.pipeline_mode<synchronous>, transform_indices = @transform_2, window_bounds = array<i64: 1, 384>}, {transform_indices = @transform_3, window_bounds = array<i64: 1, 8, 384>}, {transform_indices = @transform_4, window_bounds = array<i64: 1, 8, 2>}]} {
    %c0 = arith.constant 0 : index
    %c0_0 = arith.constant 0 : index
    %c0_1 = arith.constant 0 : index
    %0 = vector.load %arg1[%c0, %c0_0, %c0_1] : memref<1x4x384xbf16, #tpu.memory_space<vmem>>, vector<1x4x384xbf16>
    %1 = vector.shape_cast %0 : vector<1x4x384xbf16> to vector<4x384xbf16>
    %c0_2 = arith.constant 0 : index
    %c0_3 = arith.constant 0 : index
    %2 = vector.load %arg3[%c0_2, %c0_3] : memref<1x384xf32, #tpu.memory_space<vmem>>, vector<1x384xf32>
    %3 = vector.extract_strided_slice %1 {offsets = [0, 19], sizes = [4, 365], strides = [1, 1]} : vector<4x384xbf16> to vector<4x365xbf16>
    %4 = vector.extract_strided_slice %1 {offsets = [0, 0], sizes = [4, 19], strides = [1, 1]} : vector<4x384xbf16> to vector<4x19xbf16>
    %5 = tpu.concatenate %3, %4 in 1 : vector<4x365xbf16>, vector<4x19xbf16> -> vector<4x384xbf16>
    %c0_4 = arith.constant 0 : index
    %c0_5 = arith.constant 0 : index
    %c0_6 = arith.constant 0 : index
    %6 = vector.load %arg2[%c0_4, %c0_5, %c0_6] : memref<1x8x4xbf16, #tpu.memory_space<vmem>>, vector<1x8x4xbf16>
    %7 = vector.shape_cast %6 : vector<1x8x4xbf16> to vector<8x4xbf16>
    %cst = arith.constant dense<0.000000e+00> : vector<8x384xf32>
    %8 = tpu.matmul %7, %5, %cst {dimension_numbers = #tpu.dot_dimension_numbers<[1], [0], [0], [1], [0, 0, 1, 1], [], []>} : vector<8x4xbf16>, vector<4x384xbf16>, vector<8x384xf32> -> vector<8x384xf32>
    %c0_7 = arith.constant 0 : index
    %c0_8 = arith.constant 0 : index
    %c0_9 = arith.constant 0 : index
    %9 = vector.load %arg4[%c0_7, %c0_8, %c0_9] : memref<1x8x384xf32, #tpu.memory_space<vmem>>, vector<1x8x384xf32>
    %10 = vector.shape_cast %9 : vector<1x8x384xf32> to vector<8x384xf32>
    %11 = vector.shape_cast %8 : vector<8x384xf32> to vector<1x8x384xf32>
    tpu.vector_store %arg4[%c0_7, %c0_8, %c0_9], %11 {strides = array<i32>} : memref<1x8x384xf32, #tpu.memory_space<vmem>>, vector<1x8x384xf32>,
    %12 = vector.broadcast %2 : vector<1x384xf32> to vector<8x384xf32>
    %13 = arith.mulf %8, %12 : vector<8x384xf32>
    %cst_10 = arith.constant dense<0.000000e+00> : vector<8xf32>
    %14 = vector.multi_reduction <add>, %13, %cst_10 [1] : vector<8x384xf32> to vector<8xf32>
    %15 = vector.shape_cast %14 : vector<8xf32> to vector<8x1xf32>
    %16 = arith.mulf %8, %8 : vector<8x384xf32>
    %17 = vector.broadcast %2 : vector<1x384xf32> to vector<8x384xf32>
    %18 = arith.mulf %16, %17 : vector<8x384xf32>
    %cst_11 = arith.constant dense<0.000000e+00> : vector<8xf32>
    %19 = vector.multi_reduction <add>, %18, %cst_11 [1] : vector<8x384xf32> to vector<8xf32>
    %20 = vector.shape_cast %19 : vector<8xf32> to vector<8x1xf32>
    %21 = tpu.concatenate %15, %20 in 1 : vector<8x1xf32>, vector<8x1xf32> -> vector<8x2xf32>
    %c0_12 = arith.constant 0 : index
    %c0_13 = arith.constant 0 : index
    %c0_14 = arith.constant 0 : index
    %22 = vector.load %arg5[%c0_12, %c0_13, %c0_14] : memref<1x8x2xf32, #tpu.memory_space<vmem>>, vector<1x8x2xf32>
    %23 = vector.shape_cast %22 : vector<1x8x2xf32> to vector<8x2xf32>
    %24 = vector.shape_cast %21 : vector<8x2xf32> to vector<1x8x2xf32>
    tpu.vector_store %arg5[%c0_12, %c0_13, %c0_14], %24 {strides = array<i32>} : memref<1x8x2xf32, #tpu.memory_space<vmem>>, vector<1x8x2xf32>,
    return
  }
  func.func @transform_0(%arg0: i32) -> (i32, i32, i32) {
    %c0_i32 = arith.constant 0 : i32
    %c0_i32_0 = arith.constant 0 : i32
    %c0_i32_1 = arith.constant 0 : i32
    return %arg0, %c0_i32, %c0_i32_0 : i32, i32, i32
  }
  func.func @transform_1(%arg0: i32) -> (i32, i32, i32) {
    %c0_i32 = arith.constant 0 : i32
    %c0_i32_0 = arith.constant 0 : i32
    %c0_i32_1 = arith.constant 0 : i32
    %c0_i32_2 = arith.constant 0 : i32
    return %c0_i32, %c0_i32_0, %c0_i32_1 : i32, i32, i32
  }
  func.func @transform_2(%arg0: i32) -> (i32, i32) {
    %c0_i32 = arith.constant 0 : i32
    %c0_i32_0 = arith.constant 0 : i32
    %c0_i32_1 = arith.constant 0 : i32
    return %c0_i32, %c0_i32_0 : i32, i32
  }
  func.func @transform_3(%arg0: i32) -> (i32, i32, i32) {
    %c0_i32 = arith.constant 0 : i32
    %c0_i32_0 = arith.constant 0 : i32
    %c0_i32_1 = arith.constant 0 : i32
    return %arg0, %c0_i32, %c0_i32_0 : i32, i32, i32
  }
  func.func @transform_4(%arg0: i32) -> (i32, i32, i32) {
    %c0_i32 = arith.constant 0 : i32
    %c0_i32_0 = arith.constant 0 : i32
    %c0_i32_1 = arith.constant 0 : i32
    return %arg0, %c0_i32, %c0_i32_0 : i32, i32, i32
  }
}

module attributes {stable_mosaic.version = 11 : i64} {
  func.func @kernel(%arg0: i32, %arg1: memref<1x4x384xbf16, #tpu.memory_space<vmem>>, %arg2: memref<9x8x4xbf16, #tpu.memory_space<vmem>>, %arg3: memref<1x384xf32, #tpu.memory_space<vmem>>, %arg4: memref<1x8x384xbf16, #tpu.memory_space<vmem>>, %arg5: memref<1x8x2xf32, #tpu.memory_space<vmem>>) attributes {dimension_semantics = [#tpu.dimension_semantics<parallel>], iteration_bounds = array<i64: 2>, scalar_prefetch = 0 : i64, scratch_operands = 0 : i64, tpu.core_type = #tpu.core_type<tc>, window_params = [{transform_indices = @transform_0, window_bounds = array<i64: 1, 4, 384>}, {pipeline_mode = #tpu.pipeline_mode<synchronous>, transform_indices = @transform_1, window_bounds = array<i64: 9, 8, 4>}, {pipeline_mode = #tpu.pipeline_mode<synchronous>, transform_indices = @transform_2, window_bounds = array<i64: 1, 384>}, {transform_indices = @transform_3, window_bounds = array<i64: 1, 8, 384>}, {transform_indices = @transform_4, window_bounds = array<i64: 1, 8, 2>}]} {
    %c0 = arith.constant 0 : index
    %c0_0 = arith.constant 0 : index
    %c0_1 = arith.constant 0 : index
    %0 = vector.load %arg1[%c0, %c0_0, %c0_1] : memref<1x4x384xbf16, #tpu.memory_space<vmem>>, vector<1x4x384xbf16>
    %1 = vector.shape_cast %0 : vector<1x4x384xbf16> to vector<4x384xbf16>
    %c0_2 = arith.constant 0 : index
    %c0_3 = arith.constant 0 : index
    %2 = vector.load %arg3[%c0_2, %c0_3] : memref<1x384xf32, #tpu.memory_space<vmem>>, vector<1x384xf32>
    %c0_4 = arith.constant 0 : index
    %c0_5 = arith.constant 0 : index
    %c0_6 = arith.constant 0 : index
    %3 = vector.load %arg2[%c0_4, %c0_5, %c0_6] : memref<9x8x4xbf16, #tpu.memory_space<vmem>>, vector<1x8x4xbf16>
    %4 = vector.shape_cast %3 : vector<1x8x4xbf16> to vector<8x4xbf16>
    %cst = arith.constant dense<0.000000e+00> : vector<8x384xf32>
    %5 = tpu.matmul %4, %1, %cst {dimension_numbers = #tpu.dot_dimension_numbers<[1], [0], [0], [1], [0, 0, 1, 1], [], []>} : vector<8x4xbf16>, vector<4x384xbf16>, vector<8x384xf32> -> vector<8x384xf32>
    %6 = vector.extract_strided_slice %1 {offsets = [0, 1], sizes = [4, 383], strides = [1, 1]} : vector<4x384xbf16> to vector<4x383xbf16>
    %7 = vector.extract_strided_slice %1 {offsets = [0, 0], sizes = [4, 1], strides = [1, 1]} : vector<4x384xbf16> to vector<4x1xbf16>
    %8 = tpu.concatenate %6, %7 in 1 : vector<4x383xbf16>, vector<4x1xbf16> -> vector<4x384xbf16>
    %c1 = arith.constant 1 : index
    %c0_7 = arith.constant 0 : index
    %c0_8 = arith.constant 0 : index
    %9 = vector.load %arg2[%c1, %c0_7, %c0_8] : memref<9x8x4xbf16, #tpu.memory_space<vmem>>, vector<1x8x4xbf16>
    %10 = vector.shape_cast %9 : vector<1x8x4xbf16> to vector<8x4xbf16>
    %cst_9 = arith.constant dense<0.000000e+00> : vector<8x384xf32>
    %11 = tpu.matmul %10, %8, %cst_9 {dimension_numbers = #tpu.dot_dimension_numbers<[1], [0], [0], [1], [0, 0, 1, 1], [], []>} : vector<8x4xbf16>, vector<4x384xbf16>, vector<8x384xf32> -> vector<8x384xf32>
    %12 = arith.addf %5, %11 : vector<8x384xf32>
    %13 = vector.extract_strided_slice %1 {offsets = [0, 2], sizes = [4, 382], strides = [1, 1]} : vector<4x384xbf16> to vector<4x382xbf16>
    %14 = vector.extract_strided_slice %1 {offsets = [0, 0], sizes = [4, 2], strides = [1, 1]} : vector<4x384xbf16> to vector<4x2xbf16>
    %15 = tpu.concatenate %13, %14 in 1 : vector<4x382xbf16>, vector<4x2xbf16> -> vector<4x384xbf16>
    %c2 = arith.constant 2 : index
    %c0_10 = arith.constant 0 : index
    %c0_11 = arith.constant 0 : index
    %16 = vector.load %arg2[%c2, %c0_10, %c0_11] : memref<9x8x4xbf16, #tpu.memory_space<vmem>>, vector<1x8x4xbf16>
    %17 = vector.shape_cast %16 : vector<1x8x4xbf16> to vector<8x4xbf16>
    %cst_12 = arith.constant dense<0.000000e+00> : vector<8x384xf32>
    %18 = tpu.matmul %17, %15, %cst_12 {dimension_numbers = #tpu.dot_dimension_numbers<[1], [0], [0], [1], [0, 0, 1, 1], [], []>} : vector<8x4xbf16>, vector<4x384xbf16>, vector<8x384xf32> -> vector<8x384xf32>
    %19 = arith.addf %12, %18 : vector<8x384xf32>
    %20 = vector.extract_strided_slice %1 {offsets = [0, 18], sizes = [4, 366], strides = [1, 1]} : vector<4x384xbf16> to vector<4x366xbf16>
    %21 = vector.extract_strided_slice %1 {offsets = [0, 0], sizes = [4, 18], strides = [1, 1]} : vector<4x384xbf16> to vector<4x18xbf16>
    %22 = tpu.concatenate %20, %21 in 1 : vector<4x366xbf16>, vector<4x18xbf16> -> vector<4x384xbf16>
    %c3 = arith.constant 3 : index
    %c0_13 = arith.constant 0 : index
    %c0_14 = arith.constant 0 : index
    %23 = vector.load %arg2[%c3, %c0_13, %c0_14] : memref<9x8x4xbf16, #tpu.memory_space<vmem>>, vector<1x8x4xbf16>
    %24 = vector.shape_cast %23 : vector<1x8x4xbf16> to vector<8x4xbf16>
    %cst_15 = arith.constant dense<0.000000e+00> : vector<8x384xf32>
    %25 = tpu.matmul %24, %22, %cst_15 {dimension_numbers = #tpu.dot_dimension_numbers<[1], [0], [0], [1], [0, 0, 1, 1], [], []>} : vector<8x4xbf16>, vector<4x384xbf16>, vector<8x384xf32> -> vector<8x384xf32>
    %26 = arith.addf %19, %25 : vector<8x384xf32>
    %27 = vector.extract_strided_slice %1 {offsets = [0, 19], sizes = [4, 365], strides = [1, 1]} : vector<4x384xbf16> to vector<4x365xbf16>
    %28 = vector.extract_strided_slice %1 {offsets = [0, 0], sizes = [4, 19], strides = [1, 1]} : vector<4x384xbf16> to vector<4x19xbf16>
    %29 = tpu.concatenate %27, %28 in 1 : vector<4x365xbf16>, vector<4x19xbf16> -> vector<4x384xbf16>
    %c4 = arith.constant 4 : index
    %c0_16 = arith.constant 0 : index
    %c0_17 = arith.constant 0 : index
    %30 = vector.load %arg2[%c4, %c0_16, %c0_17] : memref<9x8x4xbf16, #tpu.memory_space<vmem>>, vector<1x8x4xbf16>
    %31 = vector.shape_cast %30 : vector<1x8x4xbf16> to vector<8x4xbf16>
    %cst_18 = arith.constant dense<0.000000e+00> : vector<8x384xf32>
    %32 = tpu.matmul %31, %29, %cst_18 {dimension_numbers = #tpu.dot_dimension_numbers<[1], [0], [0], [1], [0, 0, 1, 1], [], []>} : vector<8x4xbf16>, vector<4x384xbf16>, vector<8x384xf32> -> vector<8x384xf32>
    %33 = arith.addf %26, %32 : vector<8x384xf32>
    %34 = vector.extract_strided_slice %1 {offsets = [0, 20], sizes = [4, 364], strides = [1, 1]} : vector<4x384xbf16> to vector<4x364xbf16>
    %35 = vector.extract_strided_slice %1 {offsets = [0, 0], sizes = [4, 20], strides = [1, 1]} : vector<4x384xbf16> to vector<4x20xbf16>
    %36 = tpu.concatenate %34, %35 in 1 : vector<4x364xbf16>, vector<4x20xbf16> -> vector<4x384xbf16>
    %c5 = arith.constant 5 : index
    %c0_19 = arith.constant 0 : index
    %c0_20 = arith.constant 0 : index
    %37 = vector.load %arg2[%c5, %c0_19, %c0_20] : memref<9x8x4xbf16, #tpu.memory_space<vmem>>, vector<1x8x4xbf16>
    %38 = vector.shape_cast %37 : vector<1x8x4xbf16> to vector<8x4xbf16>
    %cst_21 = arith.constant dense<0.000000e+00> : vector<8x384xf32>
    %39 = tpu.matmul %38, %36, %cst_21 {dimension_numbers = #tpu.dot_dimension_numbers<[1], [0], [0], [1], [0, 0, 1, 1], [], []>} : vector<8x4xbf16>, vector<4x384xbf16>, vector<8x384xf32> -> vector<8x384xf32>
    %40 = arith.addf %33, %39 : vector<8x384xf32>
    %41 = vector.extract_strided_slice %1 {offsets = [0, 36], sizes = [4, 348], strides = [1, 1]} : vector<4x384xbf16> to vector<4x348xbf16>
    %42 = vector.extract_strided_slice %1 {offsets = [0, 0], sizes = [4, 36], strides = [1, 1]} : vector<4x384xbf16> to vector<4x36xbf16>
    %43 = tpu.concatenate %41, %42 in 1 : vector<4x348xbf16>, vector<4x36xbf16> -> vector<4x384xbf16>
    %c6 = arith.constant 6 : index
    %c0_22 = arith.constant 0 : index
    %c0_23 = arith.constant 0 : index
    %44 = vector.load %arg2[%c6, %c0_22, %c0_23] : memref<9x8x4xbf16, #tpu.memory_space<vmem>>, vector<1x8x4xbf16>
    %45 = vector.shape_cast %44 : vector<1x8x4xbf16> to vector<8x4xbf16>
    %cst_24 = arith.constant dense<0.000000e+00> : vector<8x384xf32>
    %46 = tpu.matmul %45, %43, %cst_24 {dimension_numbers = #tpu.dot_dimension_numbers<[1], [0], [0], [1], [0, 0, 1, 1], [], []>} : vector<8x4xbf16>, vector<4x384xbf16>, vector<8x384xf32> -> vector<8x384xf32>
    %47 = arith.addf %40, %46 : vector<8x384xf32>
    %48 = vector.extract_strided_slice %1 {offsets = [0, 37], sizes = [4, 347], strides = [1, 1]} : vector<4x384xbf16> to vector<4x347xbf16>
    %49 = vector.extract_strided_slice %1 {offsets = [0, 0], sizes = [4, 37], strides = [1, 1]} : vector<4x384xbf16> to vector<4x37xbf16>
    %50 = tpu.concatenate %48, %49 in 1 : vector<4x347xbf16>, vector<4x37xbf16> -> vector<4x384xbf16>
    %c7 = arith.constant 7 : index
    %c0_25 = arith.constant 0 : index
    %c0_26 = arith.constant 0 : index
    %51 = vector.load %arg2[%c7, %c0_25, %c0_26] : memref<9x8x4xbf16, #tpu.memory_space<vmem>>, vector<1x8x4xbf16>
    %52 = vector.shape_cast %51 : vector<1x8x4xbf16> to vector<8x4xbf16>
    %cst_27 = arith.constant dense<0.000000e+00> : vector<8x384xf32>
    %53 = tpu.matmul %52, %50, %cst_27 {dimension_numbers = #tpu.dot_dimension_numbers<[1], [0], [0], [1], [0, 0, 1, 1], [], []>} : vector<8x4xbf16>, vector<4x384xbf16>, vector<8x384xf32> -> vector<8x384xf32>
    %54 = arith.addf %47, %53 : vector<8x384xf32>
    %55 = vector.extract_strided_slice %1 {offsets = [0, 38], sizes = [4, 346], strides = [1, 1]} : vector<4x384xbf16> to vector<4x346xbf16>
    %56 = vector.extract_strided_slice %1 {offsets = [0, 0], sizes = [4, 38], strides = [1, 1]} : vector<4x384xbf16> to vector<4x38xbf16>
    %57 = tpu.concatenate %55, %56 in 1 : vector<4x346xbf16>, vector<4x38xbf16> -> vector<4x384xbf16>
    %c8 = arith.constant 8 : index
    %c0_28 = arith.constant 0 : index
    %c0_29 = arith.constant 0 : index
    %58 = vector.load %arg2[%c8, %c0_28, %c0_29] : memref<9x8x4xbf16, #tpu.memory_space<vmem>>, vector<1x8x4xbf16>
    %59 = vector.shape_cast %58 : vector<1x8x4xbf16> to vector<8x4xbf16>
    %cst_30 = arith.constant dense<0.000000e+00> : vector<8x384xf32>
    %60 = tpu.matmul %59, %57, %cst_30 {dimension_numbers = #tpu.dot_dimension_numbers<[1], [0], [0], [1], [0, 0, 1, 1], [], []>} : vector<8x4xbf16>, vector<4x384xbf16>, vector<8x384xf32> -> vector<8x384xf32>
    %61 = arith.addf %54, %60 : vector<8x384xf32>
    %62 = arith.truncf %61 : vector<8x384xf32> to vector<8x384xbf16>
    %c0_31 = arith.constant 0 : index
    %c0_32 = arith.constant 0 : index
    %c0_33 = arith.constant 0 : index
    %63 = vector.load %arg4[%c0_31, %c0_32, %c0_33] : memref<1x8x384xbf16, #tpu.memory_space<vmem>>, vector<1x8x384xbf16>
    %64 = vector.shape_cast %63 : vector<1x8x384xbf16> to vector<8x384xbf16>
    %65 = vector.shape_cast %62 : vector<8x384xbf16> to vector<1x8x384xbf16>
    tpu.vector_store %arg4[%c0_31, %c0_32, %c0_33], %65 {strides = array<i32>} : memref<1x8x384xbf16, #tpu.memory_space<vmem>>, vector<1x8x384xbf16>,
    %66 = vector.broadcast %2 : vector<1x384xf32> to vector<8x384xf32>
    %67 = arith.mulf %61, %66 : vector<8x384xf32>
    %cst_34 = arith.constant dense<0.000000e+00> : vector<8xf32>
    %68 = vector.multi_reduction <add>, %67, %cst_34 [1] : vector<8x384xf32> to vector<8xf32>
    %69 = vector.shape_cast %68 : vector<8xf32> to vector<8x1xf32>
    %70 = arith.mulf %61, %61 : vector<8x384xf32>
    %71 = vector.broadcast %2 : vector<1x384xf32> to vector<8x384xf32>
    %72 = arith.mulf %70, %71 : vector<8x384xf32>
    %cst_35 = arith.constant dense<0.000000e+00> : vector<8xf32>
    %73 = vector.multi_reduction <add>, %72, %cst_35 [1] : vector<8x384xf32> to vector<8xf32>
    %74 = vector.shape_cast %73 : vector<8xf32> to vector<8x1xf32>
    %75 = tpu.concatenate %69, %74 in 1 : vector<8x1xf32>, vector<8x1xf32> -> vector<8x2xf32>
    %c0_36 = arith.constant 0 : index
    %c0_37 = arith.constant 0 : index
    %c0_38 = arith.constant 0 : index
    %76 = vector.load %arg5[%c0_36, %c0_37, %c0_38] : memref<1x8x2xf32, #tpu.memory_space<vmem>>, vector<1x8x2xf32>
    %77 = vector.shape_cast %76 : vector<1x8x2xf32> to vector<8x2xf32>
    %78 = vector.shape_cast %75 : vector<8x2xf32> to vector<1x8x2xf32>
    tpu.vector_store %arg5[%c0_36, %c0_37, %c0_38], %78 {strides = array<i32>} : memref<1x8x2xf32, #tpu.memory_space<vmem>>, vector<1x8x2xf32>,
    return
  }
  func.func @transform_0(%arg0: i32) -> (i32, i32, i32) {
    %c0_i32 = arith.constant 0 : i32
    %c0_i32_0 = arith.constant 0 : i32
    %c0_i32_1 = arith.constant 0 : i32
    return %arg0, %c0_i32, %c0_i32_0 : i32, i32, i32
  }
  func.func @transform_1(%arg0: i32) -> (i32, i32, i32) {
    %c0_i32 = arith.constant 0 : i32
    %c0_i32_0 = arith.constant 0 : i32
    %c0_i32_1 = arith.constant 0 : i32
    %c0_i32_2 = arith.constant 0 : i32
    return %c0_i32, %c0_i32_0, %c0_i32_1 : i32, i32, i32
  }
  func.func @transform_2(%arg0: i32) -> (i32, i32) {
    %c0_i32 = arith.constant 0 : i32
    %c0_i32_0 = arith.constant 0 : i32
    %c0_i32_1 = arith.constant 0 : i32
    return %c0_i32, %c0_i32_0 : i32, i32
  }
  func.func @transform_3(%arg0: i32) -> (i32, i32, i32) {
    %c0_i32 = arith.constant 0 : i32
    %c0_i32_0 = arith.constant 0 : i32
    %c0_i32_1 = arith.constant 0 : i32
    return %arg0, %c0_i32, %c0_i32_0 : i32, i32, i32
  }
  func.func @transform_4(%arg0: i32) -> (i32, i32, i32) {
    %c0_i32 = arith.constant 0 : i32
    %c0_i32_0 = arith.constant 0 : i32
    %c0_i32_1 = arith.constant 0 : i32
    return %arg0, %c0_i32, %c0_i32_0 : i32, i32, i32
  }
}

module attributes {stable_mosaic.version = 11 : i64} {
  func.func @residual_bn_relu_kernel(%arg0: i32, %arg1: memref<1x8x384xf32, #tpu.memory_space<vmem>>, %arg2: memref<8x1xf32, #tpu.memory_space<vmem>>, %arg3: memref<8x1xf32, #tpu.memory_space<vmem>>, %arg4: memref<1x8x384xf32, #tpu.memory_space<vmem>>, %arg5: memref<8x1xf32, #tpu.memory_space<vmem>>, %arg6: memref<8x1xf32, #tpu.memory_space<vmem>>, %arg7: memref<1x8x384xf32, #tpu.memory_space<vmem>>) attributes {dimension_semantics = [#tpu.dimension_semantics<parallel>], iteration_bounds = array<i64: 2>, scalar_prefetch = 0 : i64, scratch_operands = 0 : i64, tpu.core_type = #tpu.core_type<tc>, window_params = [{transform_indices = @transform_0, window_bounds = array<i64: 1, 8, 384>}, {pipeline_mode = #tpu.pipeline_mode<synchronous>, transform_indices = @transform_1, window_bounds = array<i64: 8, 1>}, {pipeline_mode = #tpu.pipeline_mode<synchronous>, transform_indices = @transform_2, window_bounds = array<i64: 8, 1>}, {transform_indices = @transform_3, window_bounds = array<i64: 1, 8, 384>}, {pipeline_mode = #tpu.pipeline_mode<synchronous>, transform_indices = @transform_4, window_bounds = array<i64: 8, 1>}, {pipeline_mode = #tpu.pipeline_mode<synchronous>, transform_indices = @transform_5, window_bounds = array<i64: 8, 1>}, {transform_indices = @transform_6, window_bounds = array<i64: 1, 8, 384>}]} {
    %c0 = arith.constant 0 : index
    %c0_0 = arith.constant 0 : index
    %c0_1 = arith.constant 0 : index
    %0 = vector.load %arg1[%c0, %c0_0, %c0_1] : memref<1x8x384xf32, #tpu.memory_space<vmem>>, vector<1x8x384xf32>
    %1 = vector.shape_cast %0 : vector<1x8x384xf32> to vector<8x384xf32>
    %c0_2 = arith.constant 0 : index
    %c0_3 = arith.constant 0 : index
    %c0_4 = arith.constant 0 : index
    %2 = vector.load %arg4[%c0_2, %c0_3, %c0_4] : memref<1x8x384xf32, #tpu.memory_space<vmem>>, vector<1x8x384xf32>
    %3 = vector.shape_cast %2 : vector<1x8x384xf32> to vector<8x384xf32>
    %c0_5 = arith.constant 0 : index
    %c0_6 = arith.constant 0 : index
    %4 = vector.load %arg2[%c0_5, %c0_6] : memref<8x1xf32, #tpu.memory_space<vmem>>, vector<8x1xf32>
    %5 = vector.broadcast %4 : vector<8x1xf32> to vector<8x384xf32>
    %6 = arith.mulf %1, %5 : vector<8x384xf32>
    %c0_7 = arith.constant 0 : index
    %c0_8 = arith.constant 0 : index
    %7 = vector.load %arg3[%c0_7, %c0_8] : memref<8x1xf32, #tpu.memory_space<vmem>>, vector<8x1xf32>
    %8 = vector.broadcast %7 : vector<8x1xf32> to vector<8x384xf32>
    %9 = arith.addf %6, %8 : vector<8x384xf32>
    %c0_9 = arith.constant 0 : index
    %c0_10 = arith.constant 0 : index
    %10 = vector.load %arg5[%c0_9, %c0_10] : memref<8x1xf32, #tpu.memory_space<vmem>>, vector<8x1xf32>
    %11 = vector.broadcast %10 : vector<8x1xf32> to vector<8x384xf32>
    %12 = arith.mulf %3, %11 : vector<8x384xf32>
    %c0_11 = arith.constant 0 : index
    %c0_12 = arith.constant 0 : index
    %13 = vector.load %arg6[%c0_11, %c0_12] : memref<8x1xf32, #tpu.memory_space<vmem>>, vector<8x1xf32>
    %14 = vector.broadcast %13 : vector<8x1xf32> to vector<8x384xf32>
    %15 = arith.addf %12, %14 : vector<8x384xf32>
    %16 = arith.addf %9, %15 : vector<8x384xf32>
    %cst = arith.constant 0.000000e+00 : f32
    %17 = vector.broadcast %cst : f32 to vector<8x384xf32>
    %18 = arith.maximumf %16, %17 : vector<8x384xf32>
    %c0_13 = arith.constant 0 : index
    %c0_14 = arith.constant 0 : index
    %c0_15 = arith.constant 0 : index
    %19 = vector.load %arg7[%c0_13, %c0_14, %c0_15] : memref<1x8x384xf32, #tpu.memory_space<vmem>>, vector<1x8x384xf32>
    %20 = vector.shape_cast %19 : vector<1x8x384xf32> to vector<8x384xf32>
    %21 = vector.shape_cast %18 : vector<8x384xf32> to vector<1x8x384xf32>
    tpu.vector_store %arg7[%c0_13, %c0_14, %c0_15], %21 {strides = array<i32>} : memref<1x8x384xf32, #tpu.memory_space<vmem>>, vector<1x8x384xf32>,
    return
  }
  func.func @transform_0(%arg0: i32) -> (i32, i32, i32) {
    %c0_i32 = arith.constant 0 : i32
    %c0_i32_0 = arith.constant 0 : i32
    %c0_i32_1 = arith.constant 0 : i32
    return %arg0, %c0_i32, %c0_i32_0 : i32, i32, i32
  }
  func.func @transform_1(%arg0: i32) -> (i32, i32) {
    %c0_i32 = arith.constant 0 : i32
    %c0_i32_0 = arith.constant 0 : i32
    %c0_i32_1 = arith.constant 0 : i32
    return %c0_i32, %c0_i32_0 : i32, i32
  }
  func.func @transform_2(%arg0: i32) -> (i32, i32) {
    %c0_i32 = arith.constant 0 : i32
    %c0_i32_0 = arith.constant 0 : i32
    %c0_i32_1 = arith.constant 0 : i32
    return %c0_i32, %c0_i32_0 : i32, i32
  }
  func.func @transform_3(%arg0: i32) -> (i32, i32, i32) {
    %c0_i32 = arith.constant 0 : i32
    %c0_i32_0 = arith.constant 0 : i32
    %c0_i32_1 = arith.constant 0 : i32
    return %arg0, %c0_i32, %c0_i32_0 : i32, i32, i32
  }
  func.func @transform_4(%arg0: i32) -> (i32, i32) {
    %c0_i32 = arith.constant 0 : i32
    %c0_i32_0 = arith.constant 0 : i32
    %c0_i32_1 = arith.constant 0 : i32
    return %c0_i32, %c0_i32_0 : i32, i32
  }
  func.func @transform_5(%arg0: i32) -> (i32, i32) {
    %c0_i32 = arith.constant 0 : i32
    %c0_i32_0 = arith.constant 0 : i32
    %c0_i32_1 = arith.constant 0 : i32
    return %c0_i32, %c0_i32_0 : i32, i32
  }
  func.func @transform_6(%arg0: i32) -> (i32, i32, i32) {
    %c0_i32 = arith.constant 0 : i32
    %c0_i32_0 = arith.constant 0 : i32
    %c0_i32_1 = arith.constant 0 : i32
    return %arg0, %c0_i32, %c0_i32_0 : i32, i32, i32
  }
}

</mosaic_0001>

<bundles_post_ra>
// kernel: _lambda_.6
= control target key start
LH: loop header
LB: loop body
LE: loop exit
PB: predicated region body
PF: predicated region fallthrough
CT: control target
= control target key end

     0   :  { %s538_s15 = smov 0   ;;  %s569_s0 = inlined_call_operand.vmem [shape: bf16[2,4,384], index: 0, kind: input, shape index: {}]   ;;  %s570_s1 = inlined_call_operand.vmem [shape: bf16[1,8,4], index: 1, kind: input, shape index: {}]   ;;  %s571_s2 = inlined_call_operand.vmem [shape: f32[1,384], index: 2, kind: input, shape index: {}]   ;;  %s572_s3 = inlined_call_operand.vmem [shape: f32[2,8,384], index: 3, kind: output, shape index: {0}]   ;;  %s573_s4 = inlined_call_operand.vmem [shape: f32[2,8,2], index: 4, kind: output, shape index: {1}]  }
   0x1 LB: > { %s463_s16 = sadd.s32 4294967295, %s506_s15   ;;  %p467_p0 = scmp.ge.s32.totalorder %s506_s15, 1  ;;  %s506_s15 = sphi %s538_s15, %s15_s15  }
   0x2   : > { %p165_p1 = scmp.lt.s32.totalorder %s506_s15, 3 }
   0x4   : > { %p166_p2 = pnand %p467_p0, %p165_p1 }
   0x5   : > { %p195_p3 = scmp.lt.s32.totalorder (!%p166_p2), %s463_s16, 1  ;;  %v217_v0 = vlaneseq (!%p166_p2)  ;;  %v508_v1 = vmov (!%p166_p2), 1983009808   ;;  %v509_v3 = vmov (!%p166_p2), 0.0   ;;  %v510_v6 = vmov (!%p166_p2), 0   ;;  %s512_s21 = smov (!%p166_p2), 109  }
   0x6   : > { %169 = sbr.rel (%p166_p2) target bundleno = 509 (0x1fd), region = 32  ;;  %v215_v2 = vunpack.c.l.s4 (!%p166_p2), %v508_v1  ;;  %478 = vmatprep.subr.bf16.mxu1 (!%p166_p2), %v509_v3  ;;  %288 = vmatprep.mubr.bf16.mxu0 (!%p166_p2), %v510_v6  ;;  %vm511_vm0 = vmmov (!%p166_p2), 0   ;;  %vm235_vm1 = vcmask (!%p166_p2), 891904   ;;  %vm247_vm2 = vcmask (!%p166_p2), 1041408   ;;  %v242_v20 = vld [vmem:[%s570_s1] sm:$0xf] (!%p166_p2) }
   0x7   : > { %v218_v4 = vshrl.u32 (!%p166_p2), %v217_v0, 7  ;;  %480 = vmatprep.mubr.msk.bf16.mxu1 (!%p166_p2), %vm511_vm0, %v509_v3  ;;  %vm243_vm3 = vcmask (!%p166_p2), 31744   ;;  %v211_v23 = vld [vmem:[%s571_s2] sm:$0x7] (!%p166_p2)  ;;  %vm373_vm4 = vcmask (!%p166_p2), 7168   ;;  %vm375_vm5 = vcmask (!%p166_p2), 15360  }
   0x8   : > { %v216_v5 = vunpack.c.0.s8 (!%p166_p2), %v215_v2 }
   0x9   : > { %v343_v22 = vsub.s32 (!%p166_p2), 0, %v218_v4  ;;  %v347_v24 = vsub.s32 (!%p166_p2), 1, %v218_v4  ;;  %v351_v25 = vsub.s32 (!%p166_p2), 2, %v218_v4 }
   0xa   : > { %v219_v7 = vsub.s32 (!%p166_p2), %v216_v5, %v218_v4 }
   0xb   : > { %v344_v26 = vrot.slane (!%p166_p2), %v211_v23, %v343_v22  ;;  %v348_v28 = vrot.slane (!%p166_p2), %v211_v23, %v347_v24  ;;  %v352_v29 = vrot.slane (!%p166_p2), %v211_v23, %v351_v25 }
   0xd   : > { %s575_s16 = smov (!%p195_p3, %s463_s16), 1 }
   0xe   : > { %s484_s17 = smul.u32 6, %s575_s16  ;;  %s470_s30 = sshll.u32 %s575_s16, 3 }
   0xf   : > { %s485_s24 = smul.u32 24, %s575_s16  ;;  %s208_s7 = scalar_lea.vmem %s573_s4, %s470_s30 }
  0x10   : > { %s199_s20 = scalar_lea.vmem %s569_s0, %s484_s17 }
  0x11   : > { %v210_v8 = vld [vmem:[%s199_s20] sm:$0x3f]  ;;  %s204_s29 = scalar_lea.vmem %s572_s3, %s485_s24 }
  0x12   : > { %v220_v9 = vrot.slane %v210_v8, %v219_v7  ;;  %v213_v10 = vcombine.high %v210_v8, %v210_v8 }
  0x14   : > { %229 = vrot.lane.b32.xlu0 %v220_v9, %s512_s21  ;;  %v228_v11 = vcombine.high %v220_v9, %v220_v9  ;;  %v227_v12 = vrot.slane %v213_v10, %v219_v7 }
  0x16   : > { %233 = vrot.lane.b32.xlu1 %v227_v12, %s512_s21 }
  0x18   : > { %231 = vrot.lane.b32.xlu0 %v228_v11, %s512_s21 }
  0x86   : > { %v230_v13 = vpop.permute.xlu0 %229 }
  0x88   : > { %v234_v14 = vpop.permute.xlu1 %233 }
  0x89   : > { %v241_v15 = vsel %vm235_vm1, %v234_v14, %v230_v13 }
  0x8a   : > { %v232_v16 = vpop.permute.xlu0 %231  ;;  %v254_v17 = vsel %vm247_vm2, %v241_v15, 0 }
  0x8b   : > { %479 = vmatpush3.bf16.msra.mxu1 %v254_v17  ;;  %v237_v18 = vsel %vm235_vm1, %v232_v16, %v234_v14  ;;  %v236_v19 = vsel %vm235_vm1, %v230_v13, %v232_v16 }
  0x8c   : > { %471 = vmatprep.subr.msk.bf16.mxu0 %vm247_vm2, %v237_v18  ;;  %v249_v21 = vsel %vm247_vm2, %v236_v19, 0 }
  0x8d   : > { %257 = vmatpush1.bf16.msra.mxu0 %v249_v21 }
  0x8e   : > { %481 = vmatmul.mubr.msk.bf16.vlgmr.msra.gmra.mrb[0].mxu1 %vm243_vm3, %v242_v20 }
  0x90   : > { %472 = vmatmul.mubr.msk.bf16.vlgmr.msra.gmra.mrb[0].mxu0 %vm243_vm3, %v242_v20 }
 0x161   : > { %v331_v27 = vpop.f32.mrb[0].mxu1 }
 0x162   : > { %339 = vst [vmem:[%s204_s29 + $0x10] sm:$0xff] %v331_v27  ;;  %v482_v30 = vpop.f32.mrb[1].mxu1  ;;  %v365_v32 = vmul.f32 %v331_v27, %v331_v27  ;;  %v358_v41 = vmul.f32 %v352_v29, %v331_v27 }
 0x163   : > { %v290_v31 = vpop.f32.mrb[0].mxu0  ;;  %v334_v33 = vpop.f32.mrb[2].mxu1 }
 0x164   : > { %337 = vst [vmem:[%s204_s29] sm:$0xff] %v290_v31  ;;  %v356_v34 = vmul.f32 %v344_v26, %v290_v31  ;;  %v363_v35 = vmul.f32 %v290_v31, %v290_v31  ;;  %v292_v36 = vpop.f32.mrb[1].mxu0  ;;  %v483_v37 = vpop.f32.mrb[3].mxu1  ;;  %v368_v46 = vmul.f32 %v365_v32, %v352_v29 }
 0x165   : > { %338 = vst [vmem:[%s204_s29 + $0x8] sm:$0xff] %v292_v36  ;;  %v357_v38 = vmul.f32 %v348_v28, %v292_v36  ;;  %v364_v39 = vmul.f32 %v292_v36, %v292_v36  ;;  %v294_v40 = vpop.f32.mrb[2].mxu0 }
 0x166   : > { %v295_v42 = vpop.f32.mrb[3].mxu0  ;;  %v366_v43 = vmul.f32 %v363_v35, %v344_v26 }
 0x167   : > { %v359_v44 = vadd.f32 %v357_v38, %v356_v34  ;;  %v367_v45 = vmul.f32 %v364_v39, %v348_v28 }
 0x169   : > { %v360_v47 = vadd.f32 %v359_v44, %v358_v41  ;;  %v369_v48 = vadd.f32 %v367_v45, %v366_v43 }
 0x16b   : > { %361 = vadd.xlane.f32.xlu1 %v360_v47  ;;  %v370_v49 = vadd.f32 %v369_v48, %v368_v46 }
 0x16d   : > { %371 = vadd.xlane.f32.xlu0 %v370_v49 }
 0x1f8   : > { %v362_v50 = vpop.xlane.xlu1 %361 }
 0x1fa   : > { %v372_v51 = vpop.xlane.xlu0 %371 }
 0x1fb   : > { %v374_v52 = vsel %vm373_vm4, %v362_v50, %v372_v51 }
 0x1fc   : > { %376 = vst.msk [vmem:[%s208_s7] sm:$0xff] %vm375_vm5, %v374_v52 }
 0x1fd PF: > { %s15_s15 = sadd.s32 1, %s506_s15  }
 0x1fe   : > { %p12_p4 = scmp.ge.s32.totalorder %s15_s15, 4  }
 0x200   :  { %14 = sbr.rel (!%p12_p4) target bundleno = 1 (0x1), region = 74 }

// kernel: _lambda_.7
= control target key start
LH: loop header
LB: loop body
LE: loop exit
PB: predicated region body
PF: predicated region fallthrough
CT: control target
= control target key end

     0   :  { %s456_s21 = smov 0   ;;  %s488_s0 = inlined_call_operand.vmem [shape: f32[2,8,384], index: 0, kind: input, shape index: {}]   ;;  %s489_s1 = inlined_call_operand.vmem [shape: f32[8,1], index: 1, kind: input, shape index: {}]   ;;  %s490_s2 = inlined_call_operand.vmem [shape: f32[8,1], index: 2, kind: input, shape index: {}]   ;;  %s491_s3 = inlined_call_operand.vmem [shape: f32[2,8,384], index: 3, kind: input, shape index: {}]   ;;  %s492_s4 = inlined_call_operand.vmem [shape: f32[8,1], index: 4, kind: input, shape index: {}]   ;;  %s493_s5 = inlined_call_operand.vmem [shape: f32[8,1], index: 5, kind: input, shape index: {}]   ;;  %s494_s6 = inlined_call_operand.vmem [shape: f32[2,8,384], index: 6, kind: output, shape index: {}]  }
   0x1 LB: > { %s390_s22 = sadd.s32 4294967295, %s418_s21   ;;  %p394_p0 = scmp.ge.s32.totalorder %s418_s21, 1  ;;  %s418_s21 = sphi %s456_s21, %s16_s21  }
   0x2   : > { %p222_p1 = scmp.lt.s32.totalorder %s418_s21, 3 }
   0x4   : > { %p223_p2 = pnand %p394_p0, %p222_p1 }
   0x5   : > { %v287_v0 = vld [vmem:[%s490_s2] sm:$0xff] (!%p223_p2)  ;;  %v420_v2 = vmov (!%p223_p2), 0   ;;  %p257_p3 = scmp.lt.s32.totalorder (!%p223_p2), %s390_s22, 1 }
   0x6   : > { %226 = sbr.rel (%p223_p2) target bundleno = 149 (0x95), region = 44  ;;  %v278_v1 = vld [vmem:[%s489_s1] sm:$0xff] (!%p223_p2)  ;;  %411 = vset.pattern.permute.xlu1 (!%p223_p2), %v420_v2  ;;  %410 = vset.pattern.permute.xlu0 (!%p223_p2), %v420_v2 }
   0x7   : > { %290 = vperm.xlu1 (!%p223_p2), %411, %v287_v0   ;;  %281 = vperm.xlu0 (!%p223_p2), %410, %v278_v1   ;;  %v305_v3 = vld [vmem:[%s493_s5] sm:$0xff] (!%p223_p2) }
   0x8   : > { %v296_v4 = vld [vmem:[%s492_s4] sm:$0xff] (!%p223_p2) }
   0xb   : > { %308 = vperm.xlu1 (!%p223_p2), %411, %v305_v3   ;;  %299 = vperm.xlu0 (!%p223_p2), %410, %v296_v4  }
   0xd   : > { %s496_s22 = smov (!%p257_p3, %s390_s22), 1 }
   0xe   : > { %s400_s7 = smul.u32 24, %s496_s22 }
  0x10   : > { %s261_s10 = scalar_lea.vmem %s488_s0, %s400_s7  ;;  %s266_s13 = scalar_lea.vmem %s491_s3, %s400_s7 }
  0x11   : > { %v272_v5 = vld [vmem:[%s261_s10] sm:$0xff]  ;;  %v273_v6 = vld [vmem:[%s261_s10 + $0x8] sm:$0xff]  ;;  %v274_v9 = vld [vmem:[%s261_s10 + $0x10] sm:$0xff]  ;;  %s271_s16 = scalar_lea.vmem %s494_s6, %s400_s7 }
  0x12   : > { %v275_v12 = vld [vmem:[%s266_s13] sm:$0xff]  ;;  %v276_v13 = vld [vmem:[%s266_s13 + $0x8] sm:$0xff]  ;;  %v277_v14 = vld [vmem:[%s266_s13 + $0x10] sm:$0xff] }
  0x86   : > { %v291_v7 = vpop.permute.xlu1 %290  ;;  %v282_v8 = vpop.permute.xlu0 %281 }
  0x87   : > { %v284_v10 = vmul.f32 %v282_v8, %v272_v5  ;;  %v285_v11 = vmul.f32 %v282_v8, %v273_v6  ;;  %v286_v15 = vmul.f32 %v282_v8, %v274_v9 }
  0x89   : > { %v293_v20 = vadd.f32 %v291_v7, %v284_v10  ;;  %v294_v21 = vadd.f32 %v291_v7, %v285_v11  ;;  %v295_v23 = vadd.f32 %v291_v7, %v286_v15 }
  0x8a   : > { %v300_v16 = vpop.permute.xlu0 %299  ;;  %v309_v22 = vpop.permute.xlu1 %308 }
  0x8b   : > { %v302_v17 = vmul.f32 %v300_v16, %v275_v12  ;;  %v303_v18 = vmul.f32 %v300_v16, %v276_v13  ;;  %v304_v19 = vmul.f32 %v300_v16, %v277_v14 }
  0x8d   : > { %v311_v24 = vadd.f32 %v309_v22, %v302_v17  ;;  %v312_v25 = vadd.f32 %v309_v22, %v303_v18  ;;  %v313_v26 = vadd.f32 %v309_v22, %v304_v19 }
  0x8f   : > { %v314_v27 = vadd.f32 %v311_v24, %v293_v20  ;;  %v315_v28 = vadd.f32 %v312_v25, %v294_v21  ;;  %v316_v29 = vadd.f32 %v313_v26, %v295_v23 }
  0x91   : > { %v317_v30 = vmax.f32 %v314_v27, 0.0  ;;  %v318_v31 = vmax.f32 %v315_v28, 0.0  ;;  %v319_v32 = vmax.f32 %v316_v29, 0.0 }
  0x93   : > { %320 = vst [vmem:[%s271_s16] sm:$0xff] %v317_v30  ;;  %321 = vst [vmem:[%s271_s16 + $0x8] sm:$0xff] %v318_v31 }
  0x94   : > { %322 = vst [vmem:[%s271_s16 + $0x10] sm:$0xff] %v319_v32 }
  0x95 PF: > { %s16_s21 = sadd.s32 1, %s418_s21  }
  0x96   : > { %p13_p4 = scmp.ge.s32.totalorder %s16_s21, 4  }
  0x98   :  { %15 = sbr.rel (!%p13_p4) target bundleno = 1 (0x1), region = 77 }

// kernel: _lambda_.5
= control target key start
LH: loop header
LB: loop body
LE: loop exit
PB: predicated region body
PF: predicated region fallthrough
CT: control target
= control target key end

     0   :  { %s1655_s21 = smov 0   ;;  %s1853_s0 = inlined_call_operand.vmem [shape: bf16[2,8,384], index: 0, kind: input, shape index: {}]   ;;  %s1854_s1 = inlined_call_operand.vmem [shape: bf16[9,8,8], index: 1, kind: input, shape index: {}]   ;;  %s1855_s2 = inlined_call_operand.vmem [shape: f32[8,1], index: 2, kind: input, shape index: {}]   ;;  %s1856_s3 = inlined_call_operand.vmem [shape: f32[8,1], index: 3, kind: input, shape index: {}]   ;;  %s1857_s4 = inlined_call_operand.vmem [shape: f32[1,384], index: 4, kind: input, shape index: {}]   ;;  %s1858_s5 = inlined_call_operand.vmem [shape: f32[2,8,384], index: 5, kind: output, shape index: {0}]   ;;  %s1859_s6 = inlined_call_operand.vmem [shape: f32[2,8,2], index: 6, kind: output, shape index: {1}]  }
   0x1 LB: > { %s1398_s22 = sadd.s32 4294967295, %s1607_s21   ;;  %p1402_p0 = scmp.ge.s32.totalorder %s1607_s21, 1  ;;  %s1607_s21 = sphi %s1655_s21, %s17_s21  }
   0x2   : > { %p215_p1 = scmp.lt.s32.totalorder %s1607_s21, 3 }
   0x4   : > { %p216_p2 = pnand %p1402_p0, %p215_p1 }
   0x5   : > { %v270_v0 = vld [vmem:[%s1855_s2] sm:$0xff] (!%p216_p2)  ;;  %v1609_v1 = vmov (!%p216_p2), 0   ;;  %p249_p3 = scmp.lt.s32.totalorder (!%p216_p2), %s1398_s22, 1  ;;  %v292_v3 = vlaneseq (!%p216_p2)  ;;  %v1610_v12 = vmov (!%p216_p2), 0.0   ;;  %vm1611_vm0 = vmmov (!%p216_p2), 0   ;;  %s1612_s9 = smov (!%p216_p2), 18  }
   0x6   : > { %219 = sbr.rel (%p216_p2) target bundleno = 732 (0x2dc), region = 40  ;;  %1600 = vset.pattern.permute.xlu0 (!%p216_p2), %v1609_v1  ;;  %390 = vmatprep.mubr.bf16.mxu0 (!%p216_p2), %v1609_v1  ;;  %v279_v2 = vld [vmem:[%s1856_s3] sm:$0xff] (!%p216_p2)  ;;  %s1613_s10 = smov (!%p216_p2), 19   ;;  %vm336_vm1 = vcmask (!%p216_p2), 146432   ;;  %vm349_vm2 = vcmask (!%p216_p2), 1043456   ;;  %vm345_vm3 = vcmask (!%p216_p2), 64512  }
   0x7   : > { %273 = vperm.xlu0 (!%p216_p2), %1600, %v270_v0   ;;  %v293_v6 = vshrl.u32 (!%p216_p2), %v292_v3, 7  ;;  %1461 = vmatprep.subr.bf16.mxu1 (!%p216_p2), %v1610_v12  ;;  %v264_v14 = vld [vmem:[%s1857_s4] sm:$0x7] (!%p216_p2)  ;;  %s1614_s11 = smov (!%p216_p2), 17   ;;  %s1615_s12 = smov (!%p216_p2), 1   ;;  %vm322_vm4 = vcmask (!%p216_p2), 154624  }
   0x8   : > { %1463 = vmatprep.mubr.msk.bf16.mxu1 (!%p216_p2), %vm1611_vm0, %v1610_v12  ;;  %s1616_s13 = smov (!%p216_p2), 127   ;;  %s1617_s14 = smov (!%p216_p2), 111   ;;  %v1406_v39 = vld [vmem:[%s1854_s1 + $0x4] sm:$0xf] (!%p216_p2)  ;;  %vm537_vm5 = vcmask (!%p216_p2), 138240   ;;  %vm647_vm6 = vcmask (!%p216_p2), 7168  }
   0x9   : > { %v298_v11 = vsub.s32 (!%p216_p2), 1, %v293_v6  ;;  %v302_v13 = vsub.s32 (!%p216_p2), 2, %v293_v6  ;;  %v294_v15 = vsub.s32 (!%p216_p2), 0, %v293_v6  ;;  %s1618_s15 = smov (!%p216_p2), 110   ;;  %s1619_s16 = smov (!%p216_p2), 109   ;;  %vm855_vm7 = vcmask (!%p216_p2), 1039360  }
   0xa   : > { %v329_v55 = vld [vmem:[%s1854_s1] sm:$0xf] (!%p216_p2)  ;;  %v1413_v3 = vld [vmem:[%s1854_s1 + $0x8] sm:$0xf] (!%p216_p2)  ;;  %vm965_vm8 = vcmask (!%p216_p2), 908288   ;;  %vm1075_vm9 = vcmask (!%p216_p2), 900096  }
   0xb   : > { %282 = vperm.xlu0 (!%p216_p2), %1600, %v279_v2   ;;  %v1681_v20 = vrot.slane (!%p216_p2), %v264_v14, %v298_v11  ;;  %v1685_v24 = vrot.slane (!%p216_p2), %v264_v14, %v302_v13  ;;  %v1687_v28 = vrot.slane (!%p216_p2), %v264_v14, %v294_v15  ;;  %vm1185_vm10 = vcmask (!%p216_p2), 891904  }
   0xc   : > { %vm1310_vm11 = vcmask (!%p216_p2), 15360  }
   0xd   : > { %s1861_s22 = smov (!%p249_p3, %s1398_s22), 1 }
   0xe   : > { %s1579_s27 = smul.u32 12, %s1861_s22  ;;  %s1405_s17 = sshll.u32 %s1861_s22, 3 }
   0xf   : > { %s262_s20 = scalar_lea.vmem %s1859_s6, %s1405_s17 }
  0x10   : > { %s253_s30 = scalar_lea.vmem %s1853_s0, %s1579_s27 }
  0x11   : > { %v265_v4 = vld [vmem:[%s253_s30] sm:$0xff]  ;;  %v266_v5 = vld [vmem:[%s253_s30 + $0x8] sm:$0xf] }
  0x12   : > { %v267_v7 = vunpack.c.l.bf16 %v265_v4  ;;  %v268_v8 = vunpack.c.h.bf16 %v265_v4  ;;  %v269_v9 = vunpack.c.l.bf16 %v266_v5 }
  0x86   : > { %v274_v10 = vpop.permute.xlu0 %273 }
  0x87   : > { %v276_v16 = vmul.f32 %v274_v10, %v267_v7  ;;  %v277_v17 = vmul.f32 %v274_v10, %v268_v8  ;;  %v278_v18 = vmul.f32 %v274_v10, %v269_v9  ;;  %v1417_v7 = vld [vmem:[%s1854_s1 + $0xc] sm:$0xf] }
  0x8a   : > { %v283_v19 = vpop.permute.xlu0 %282 }
  0x8b   : > { %v285_v21 = vadd.f32 %v283_v19, %v276_v16  ;;  %v286_v22 = vadd.f32 %v283_v19, %v277_v17  ;;  %v287_v23 = vadd.f32 %v283_v19, %v278_v18  ;;  %v1421_v17 = vld [vmem:[%s1854_s1 + $0x10] sm:$0xf] }
  0x8d   : > { %v288_v25 = vmax.f32 %v285_v21, 0.0  ;;  %v289_v26 = vmax.f32 %v286_v22, 0.0  ;;  %v290_v27 = vmax.f32 %v287_v23, 0.0 }
  0x8f   : > { %v308_v29 = vmul.f32 %v1681_v20, %v289_v26  ;;  %v309_v30 = vmul.f32 %v1685_v24, %v290_v27  ;;  %v307_v31 = vmul.f32 %v1687_v28, %v288_v25  ;;  %v1425_v27 = vld [vmem:[%s1854_s1 + $0x14] sm:$0xf] }
  0x91   : > { %v1692_v32 = vpack.c.bf16 %v308_v29, %v308_v29  ;;  %v1694_v33 = vpack.c.bf16 %v309_v30, %v309_v30  ;;  %v1698_v34 = vpack.c.bf16 %v307_v31, %v307_v31 }
  0x93   : > { %330 = vrot.lane.b32.xlu1 %v1694_v33, %s1612_s9  ;;  %334 = vrot.lane.b32.xlu0 %v1692_v32, %s1612_s9  ;;  %v763_v9 = vsel %vm349_vm2, %v1694_v33, 0  ;;  %v757_v13 = vsel %vm349_vm2, %v1698_v34, 0 }
  0x97   : > { %318 = vrot.lane.b32.xlu0 %v1698_v34, %s1613_s10  ;;  %332 = vrot.lane.b32.xlu1 %v1698_v34, %s1612_s9 }
  0x9b   : > { %531 = vrot.lane.b32.xlu0 %v1694_v33, %s1614_s11  ;;  %314 = vrot.lane.b32.xlu1 %v1694_v33, %s1613_s10 }
  0x9f   : > { %535 = vrot.lane.b32.xlu0 %v1692_v32, %s1614_s11  ;;  %320 = vrot.lane.b32.xlu1 %v1692_v32, %s1613_s10 }
  0xa3   : > { %643 = vrot.lane.b32.xlu0 %v1698_v34, %s1615_s12  ;;  %533 = vrot.lane.b32.xlu1 %v1698_v34, %s1614_s11 }
  0xa7   : > { %849 = vrot.lane.b32.xlu0 %v1698_v34, %s1616_s13  ;;  %641 = vrot.lane.b32.xlu1 %v1694_v33, %s1615_s12 }
  0xab   : > { %853 = vrot.lane.b32.xlu0 %v1694_v33, %s1616_s13  ;;  %645 = vrot.lane.b32.xlu1 %v1692_v32, %s1615_s12 }
  0xaf   : > { %961 = vrot.lane.b32.xlu0 %v1692_v32, %s1617_s14  ;;  %851 = vrot.lane.b32.xlu1 %v1692_v32, %s1616_s13  ;;  %s1580_s13 = smul.u32 24, %s1861_s22 }
  0xb3   : > { %1069 = vrot.lane.b32.xlu0 %v1698_v34, %s1618_s15  ;;  %959 = vrot.lane.b32.xlu1 %v1698_v34, %s1617_s14 }
  0xb7   : > { %1073 = vrot.lane.b32.xlu0 %v1694_v33, %s1618_s15  ;;  %963 = vrot.lane.b32.xlu1 %v1694_v33, %s1617_s14 }
  0xbb   : > { %1181 = vrot.lane.b32.xlu0 %v1692_v32, %s1619_s16  ;;  %1071 = vrot.lane.b32.xlu1 %v1692_v32, %s1618_s15 }
  0xbf   : > { %1179 = vrot.lane.b32.xlu1 %v1698_v34, %s1619_s16 }
  0xc3   : > { %1183 = vrot.lane.b32.xlu1 %v1694_v33, %s1619_s16  ;;  %s258_s16 = scalar_lea.vmem %s1858_s5, %s1580_s13 }
 0x105   : > { %v331_v35 = vpop.permute.xlu1 %330  ;;  %v335_v36 = vpop.permute.xlu0 %334 }
 0x106   : > { %v338_v37 = vsel %vm336_vm1, %v335_v36, %v331_v35 }
 0x107   : > { %v356_v38 = vsel %vm349_vm2, %v338_v37, 0 }
 0x108   : > { %1462 = vmatpush3.bf16.msra.mxu1 %v356_v38  ;;  %v1429_v38 = vld [vmem:[%s1854_s1 + $0x18] sm:$0xf] }
 0x109   : > { %v319_v40 = vpop.permute.xlu0 %318  ;;  %v333_v41 = vpop.permute.xlu1 %332  ;;  %1467 = vmatprep.subr.bf16.mxu1 %v1610_v12 }
 0x10a   : > { %v337_v42 = vsel %vm336_vm1, %v333_v41, %v335_v36  ;;  %v342_v43 = vsel %vm336_vm1, %v331_v35, %v333_v41 }
 0x10b   : > { %1407 = vmatprep.subr.msk.bf16.mxu0 %vm349_vm2, %v337_v42  ;;  %1464 = vmatmul.mubr.msk.bf16.vlgmr.msra.gmra.mrb[0].mxu1 %vm345_vm3, %v1406_v39  ;;  %v350_v44 = vsel %vm349_vm2, %v342_v43, 0 }
 0x10c   : > { %359 = vmatpush1.bf16.msra.mxu0 %v350_v44  ;;  %1469 = vmatprep.mubr.msk.bf16.mxu1 %vm1611_vm0, %v1610_v12 }
 0x10d   : > { %v532_v45 = vpop.permute.xlu0 %531  ;;  %v315_v46 = vpop.permute.xlu1 %314 }
 0x10e   : > { %v328_v47 = vsel %vm322_vm4, %v315_v46, %v319_v40 }
 0x10f   : > { %1408 = vmatmul.mubr.msk.bf16.vlgmr.msra.gmra.mrb[0].mxu0 %vm345_vm3, %v1406_v39  ;;  %v442_v52 = vsel %vm349_vm2, %v328_v47, 0 }
 0x110   : > { %482 = vmatprep.mubr.bf16.mxu0 %v1609_v1 }
 0x111   : > { %v536_v48 = vpop.permute.xlu0 %535  ;;  %v321_v49 = vpop.permute.xlu1 %320 }
 0x112   : > { %v323_v50 = vsel %vm322_vm4, %v319_v40, %v321_v49  ;;  %v324_v51 = vsel %vm322_vm4, %v321_v49, %v315_v46  ;;  %v539_v54 = vsel %vm537_vm5, %v536_v48, %v532_v45  ;;  %v1433_v46 = vld [vmem:[%s1854_s1 + $0x1c] sm:$0xf] }
 0x113   : > { %v448_v53 = vsel %vm349_vm2, %v324_v51, 0  ;;  %1410 = vmatprep.subr.msk.bf16.mxu0 %vm349_vm2, %v323_v50  ;;  %v555_v58 = vsel %vm349_vm2, %v539_v54, 0  ;;  %v1437_v50 = vld [vmem:[%s1854_s1 + $0x20] sm:$0xf] }
 0x114   : > { %451 = vmatpush1.bf16.msra.mxu0 %v442_v52  ;;  %1468 = vmatpush3.bf16.msra.mxu1 %v448_v53 }
 0x115   : > { %v534_v56 = vpop.permute.xlu1 %533  ;;  %1473 = vmatprep.subr.bf16.mxu1 %v1610_v12  ;;  %v644_v62 = vpop.permute.xlu0 %643 }
 0x116   : > { %v538_v57 = vsel %vm537_vm5, %v534_v56, %v536_v48  ;;  %v543_v59 = vsel %vm537_vm5, %v532_v45, %v534_v56 }
 0x117   : > { %1470 = vmatmul.mubr.msk.bf16.vlgmr.msra.gmra.mrb[0].mxu1 %vm345_vm3, %v329_v55  ;;  %1414 = vmatprep.subr.msk.bf16.mxu0 %vm349_vm2, %v538_v57  ;;  %v549_v61 = vsel %vm349_vm2, %v543_v59, 0 }
 0x118   : > { %1474 = vmatpush3.bf16.msra.mxu1 %v555_v58  ;;  %1475 = vmatprep.mubr.msk.bf16.mxu1 %vm1611_vm0, %v1610_v12 }
 0x119   : > { %v642_v60 = vpop.permute.xlu1 %641  ;;  %1479 = vmatprep.subr.bf16.mxu1 %v1610_v12  ;;  %v850_v8 = vpop.permute.xlu0 %849 }
 0x11a   : > { %v653_v5 = vsel %vm647_vm6, %v642_v60, %v644_v62 }
 0x11b   : > { %1411 = vmatmul.mubr.msk.bf16.vlgmr.msra.gmra.mrb[0].mxu0 %vm345_vm3, %v329_v55  ;;  %v659_v6 = vsel %vm349_vm2, %v653_v5, 0 }
 0x11c   : > { %558 = vmatpush1.bf16.msra.mxu0 %v549_v61  ;;  %589 = vmatprep.mubr.bf16.mxu0 %v1609_v1 }
 0x11d   : > { %v646_v63 = vpop.permute.xlu1 %645  ;;  %v854_v11 = vpop.permute.xlu0 %853 }
 0x11e   : > { %v648_v0 = vsel %vm647_vm6, %v644_v62, %v646_v63  ;;  %v649_v2 = vsel %vm647_vm6, %v646_v63, %v642_v60  ;;  %v861_v16 = vsel %vm855_vm7, %v854_v11, %v850_v8 }
 0x11f   : > { %1418 = vmatprep.subr.msk.bf16.mxu0 %vm349_vm2, %v648_v0  ;;  %v665_v4 = vsel %vm349_vm2, %v649_v2, 0  ;;  %v873_v18 = vsel %vm349_vm2, %v861_v16, 0 }
 0x121   : > { %v852_v10 = vpop.permute.xlu1 %851  ;;  %v962_v22 = vpop.permute.xlu0 %961 }
 0x122   : > { %v857_v14 = vsel %vm855_vm7, %v852_v10, %v854_v11  ;;  %v856_v19 = vsel %vm855_vm7, %v850_v8, %v852_v10 }
 0x123   : > { %1476 = vmatmul.mubr.msk.bf16.vlgmr.msra.gmra.mrb[0].mxu1 %vm345_vm3, %v1413_v3  ;;  %v868_v23 = vsel %vm349_vm2, %v856_v19, 0 }
 0x124   : > { %1480 = vmatpush3.bf16.msra.mxu1 %v665_v4  ;;  %1481 = vmatprep.mubr.msk.bf16.mxu1 %vm1611_vm0, %v1610_v12 }
 0x125   : > { %1485 = vmatprep.subr.bf16.mxu1 %v1610_v12  ;;  %v960_v15 = vpop.permute.xlu1 %959  ;;  %v1070_v29 = vpop.permute.xlu0 %1069 }
 0x126   : > { %v966_v31 = vsel %vm965_vm8, %v960_v15, %v962_v22 }
 0x127   : > { %1415 = vmatmul.mubr.msk.bf16.vlgmr.msra.gmra.mrb[0].mxu0 %vm345_vm3, %v1413_v3  ;;  %v978_v33 = vsel %vm349_vm2, %v966_v31, 0 }
 0x128   : > { %668 = vmatpush1.bf16.msra.mxu0 %v659_v6  ;;  %699 = vmatprep.mubr.bf16.mxu0 %v1609_v1 }
 0x129   : > { %1422 = vmatprep.subr.msk.bf16.mxu0 %vm349_vm2, %v1692_v32  ;;  %v964_v21 = vpop.permute.xlu1 %963  ;;  %v1074_v34 = vpop.permute.xlu0 %1073 }
 0x12a   : > { %v967_v25 = vsel %vm965_vm8, %v962_v22, %v964_v21  ;;  %v971_v26 = vsel %vm965_vm8, %v964_v21, %v960_v15  ;;  %v1081_v37 = vsel %vm1075_vm9, %v1074_v34, %v1070_v29 }
 0x12b   : > { %v983_v30 = vsel %vm349_vm2, %v971_v26, 0  ;;  %v1093_v39 = vsel %vm349_vm2, %v1081_v37, 0 }
 0x12d   : > { %v1072_v32 = vpop.permute.xlu1 %1071  ;;  %v1182_v42 = vpop.permute.xlu0 %1181 }
 0x12e   : > { %v1077_v35 = vsel %vm1075_vm9, %v1072_v32, %v1074_v34  ;;  %v1076_v40 = vsel %vm1075_vm9, %v1070_v29, %v1072_v32 }
 0x12f   : > { %1482 = vmatmul.mubr.msk.bf16.vlgmr.msra.gmra.mrb[0].mxu1 %vm345_vm3, %v1417_v7  ;;  %v1088_v43 = vsel %vm349_vm2, %v1076_v40, 0 }
 0x130   : > { %1486 = vmatpush3.bf16.msra.mxu1 %v763_v9  ;;  %1487 = vmatprep.mubr.msk.bf16.mxu1 %vm1611_vm0, %v1610_v12 }
 0x131   : > { %1491 = vmatprep.subr.bf16.mxu1 %v1610_v12  ;;  %v1180_v36 = vpop.permute.xlu1 %1179 }
 0x132   : > { %v1186_v48 = vsel %vm1185_vm10, %v1180_v36, %v1182_v42 }
 0x133   : > { %1419 = vmatmul.mubr.msk.bf16.vlgmr.msra.gmra.mrb[0].mxu0 %vm345_vm3, %v1417_v7  ;;  %v1198_v49 = vsel %vm349_vm2, %v1186_v48, 0 }
 0x134   : > { %766 = vmatpush1.bf16.msra.mxu0 %v757_v13  ;;  %797 = vmatprep.mubr.bf16.mxu0 %v1609_v1 }
 0x135   : > { %1426 = vmatprep.subr.msk.bf16.mxu0 %vm349_vm2, %v857_v14  ;;  %v1184_v41 = vpop.permute.xlu1 %1183 }
 0x136   : > { %v1187_v44 = vsel %vm1185_vm10, %v1182_v42, %v1184_v41  ;;  %v1191_v45 = vsel %vm1185_vm10, %v1184_v41, %v1180_v36 }
 0x137   : > { %v1203_v47 = vsel %vm349_vm2, %v1191_v45, 0 }
 0x13b   : > { %1488 = vmatmul.mubr.msk.bf16.vlgmr.msra.gmra.mrb[0].mxu1 %vm345_vm3, %v1421_v17 }
 0x13c   : > { %1492 = vmatpush3.bf16.msra.mxu1 %v873_v18  ;;  %1493 = vmatprep.mubr.msk.bf16.mxu1 %vm1611_vm0, %v1610_v12 }
 0x13d   : > { %1497 = vmatprep.subr.bf16.mxu1 %v1610_v12 }
 0x13f   : > { %1423 = vmatmul.mubr.msk.bf16.vlgmr.msra.gmra.mrb[0].mxu0 %vm345_vm3, %v1421_v17 }
 0x140   : > { %876 = vmatpush1.bf16.msra.mxu0 %v868_v23  ;;  %907 = vmatprep.mubr.bf16.mxu0 %v1609_v1 }
 0x141   : > { %1430 = vmatprep.subr.msk.bf16.mxu0 %vm349_vm2, %v967_v25 }
 0x147   : > { %1494 = vmatmul.mubr.msk.bf16.vlgmr.msra.gmra.mrb[0].mxu1 %vm345_vm3, %v1425_v27 }
 0x148   : > { %1498 = vmatpush3.bf16.msra.mxu1 %v983_v30  ;;  %1499 = vmatprep.mubr.msk.bf16.mxu1 %vm1611_vm0, %v1610_v12 }
 0x149   : > { %1503 = vmatprep.subr.bf16.mxu1 %v1610_v12 }
 0x14b   : > { %1427 = vmatmul.mubr.msk.bf16.vlgmr.msra.gmra.mrb[0].mxu0 %vm345_vm3, %v1425_v27 }
 0x14c   : > { %986 = vmatpush1.bf16.msra.mxu0 %v978_v33  ;;  %1017 = vmatprep.mubr.bf16.mxu0 %v1609_v1 }
 0x14d   : > { %1434 = vmatprep.subr.msk.bf16.mxu0 %vm349_vm2, %v1077_v35 }
 0x153   : > { %1500 = vmatmul.mubr.msk.bf16.vlgmr.msra.gmra.mrb[0].mxu1 %vm345_vm3, %v1429_v38 }
 0x154   : > { %1504 = vmatpush3.bf16.msra.mxu1 %v1093_v39  ;;  %1505 = vmatprep.mubr.msk.bf16.mxu1 %vm1611_vm0, %v1610_v12 }
 0x155   : > { %1509 = vmatprep.subr.bf16.mxu1 %v1610_v12 }
 0x157   : > { %1431 = vmatmul.mubr.msk.bf16.vlgmr.msra.gmra.mrb[0].mxu0 %vm345_vm3, %v1429_v38 }
 0x158   : > { %1096 = vmatpush1.bf16.msra.mxu0 %v1088_v43  ;;  %1127 = vmatprep.mubr.bf16.mxu0 %v1609_v1 }
 0x159   : > { %1438 = vmatprep.subr.msk.bf16.mxu0 %vm349_vm2, %v1187_v44 }
 0x15f   : > { %1506 = vmatmul.mubr.msk.bf16.vlgmr.msra.gmra.mrb[0].mxu1 %vm345_vm3, %v1433_v46 }
 0x160   : > { %1510 = vmatpush3.bf16.msra.mxu1 %v1203_v47  ;;  %1511 = vmatprep.mubr.msk.bf16.mxu1 %vm1611_vm0, %v1610_v12 }
 0x163   : > { %1435 = vmatmul.mubr.msk.bf16.vlgmr.msra.gmra.mrb[0].mxu0 %vm345_vm3, %v1433_v46 }
 0x164   : > { %1206 = vmatpush1.bf16.msra.mxu0 %v1198_v49  ;;  %1237 = vmatprep.mubr.bf16.mxu0 %v1609_v1 }
 0x16b   : > { %1512 = vmatmul.mubr.msk.bf16.vlgmr.msra.gmra.mrb[0].mxu1 %vm345_vm3, %v1437_v50 }
 0x16f   : > { %1439 = vmatmul.mubr.msk.bf16.vlgmr.msra.gmra.mrb[0].mxu0 %vm345_vm3, %v1437_v50 }
 0x23e   : > { %v1280_v12 = vpop.f32.mrb[0].mxu1 }
 0x23f   : > { %1291 = vst [vmem:[%s258_s16 + $0x10] sm:$0xff] %v1280_v12  ;;  %v1513_v51 = vpop.f32.mrb[1].mxu1  ;;  %v1301_v57 = vmul.f32 %v1280_v12, %v1280_v12  ;;  %v1294_v63 = vmul.f32 %v1280_v12, %v1685_v24 }
 0x240   : > { %v1283_v52 = vpop.f32.mrb[2].mxu1 }
 0x241   : > { %v1514_v53 = vpop.f32.mrb[3].mxu1  ;;  %v1304_v4 = vmul.f32 %v1301_v57, %v1685_v24 }
 0x242   : > { %v1239_v54 = vpop.f32.mrb[0].mxu0 }
 0x243   : > { %1289 = vst [vmem:[%s258_s16] sm:$0xff] %v1239_v54  ;;  %v1292_v1 = vmul.f32 %v1239_v54, %v1687_v28  ;;  %v1299_v55 = vmul.f32 %v1239_v54, %v1239_v54  ;;  %v1241_v56 = vpop.f32.mrb[1].mxu0 }
 0x244   : > { %1290 = vst [vmem:[%s258_s16 + $0x8] sm:$0xff] %v1241_v56  ;;  %v1293_v58 = vmul.f32 %v1241_v56, %v1681_v20  ;;  %v1300_v59 = vmul.f32 %v1241_v56, %v1241_v56  ;;  %v1243_v60 = vpop.f32.mrb[2].mxu0 }
 0x245   : > { %v1244_v61 = vpop.f32.mrb[3].mxu0  ;;  %v1302_v62 = vmul.f32 %v1299_v55, %v1687_v28 }
 0x246   : > { %v1295_v0 = vadd.f32 %v1293_v58, %v1292_v1  ;;  %v1303_v2 = vmul.f32 %v1300_v59, %v1681_v20 }
 0x248   : > { %v1296_v3 = vadd.f32 %v1295_v0, %v1294_v63  ;;  %v1305_v5 = vadd.f32 %v1303_v2, %v1302_v62 }
 0x24a   : > { %1297 = vadd.xlane.f32.xlu0 %v1296_v3  ;;  %v1306_v6 = vadd.f32 %v1305_v5, %v1304_v4 }
 0x24c   : > { %1307 = vadd.xlane.f32.xlu1 %v1306_v6 }
 0x2d7   : > { %v1298_v7 = vpop.xlane.xlu0 %1297 }
 0x2d9   : > { %v1308_v28 = vpop.xlane.xlu1 %1307 }
 0x2da   : > { %v1309_v8 = vsel %vm647_vm6, %v1298_v7, %v1308_v28 }
 0x2db   : > { %1311 = vst.msk [vmem:[%s262_s20] sm:$0xff] %vm1310_vm11, %v1309_v8 }
 0x2dc PF: > { %s17_s21 = sadd.s32 1, %s1607_s21  }
 0x2dd   : > { %p14_p4 = scmp.ge.s32.totalorder %s17_s21, 4  }
 0x2df   :  { %16 = sbr.rel (!%p14_p4) target bundleno = 1 (0x1), region = 90 }

// kernel: _lambda_.4
= control target key start
LH: loop header
LB: loop body
LE: loop exit
PB: predicated region body
PF: predicated region fallthrough
CT: control target
= control target key end

     0   :  { %s1593_s15 = smov 0   ;;  %s1735_s0 = inlined_call_operand.vmem [shape: bf16[2,4,384], index: 0, kind: input, shape index: {}]   ;;  %s1736_s1 = inlined_call_operand.vmem [shape: bf16[9,8,4], index: 1, kind: input, shape index: {}]   ;;  %s1737_s2 = inlined_call_operand.vmem [shape: f32[1,384], index: 2, kind: input, shape index: {}]   ;;  %s1738_s3 = inlined_call_operand.vmem [shape: bf16[2,8,384], index: 3, kind: output, shape index: {0}]   ;;  %s1739_s4 = inlined_call_operand.vmem [shape: f32[2,8,2], index: 4, kind: output, shape index: {1}]  }
   0x1 LB: > { %s1340_s16 = sadd.s32 4294967295, %s1554_s15   ;;  %p1344_p0 = scmp.ge.s32.totalorder %s1554_s15, 1  ;;  %s1554_s15 = sphi %s1593_s15, %s15_s15  }
   0x2   : > { %p165_p1 = scmp.lt.s32.totalorder %s1554_s15, 3 }
   0x4   : > { %p166_p2 = pnand %p1344_p0, %p165_p1 }
   0x5   : > { %p195_p3 = scmp.lt.s32.totalorder (!%p166_p2), %s1340_s16, 1  ;;  %v218_v0 = vlaneseq (!%p166_p2)  ;;  %v1556_v1 = vmov (!%p166_p2), 1983009808   ;;  %v1557_v3 = vmov (!%p166_p2), 0.0   ;;  %vm1558_vm0 = vmmov (!%p166_p2), 0   ;;  %s1560_s21 = smov (!%p166_p2), 127  }
   0x6   : > { %169 = sbr.rel (%p166_p2) target bundleno = 605 (0x25d), region = 32  ;;  %v216_v2 = vunpack.c.l.s4 (!%p166_p2), %v1556_v1  ;;  %1407 = vmatprep.subr.bf16.mxu1 (!%p166_p2), %v1557_v3  ;;  %1409 = vmatprep.mubr.msk.bf16.mxu1 (!%p166_p2), %vm1558_vm0, %v1557_v3  ;;  %v1559_v7 = vmov (!%p166_p2), 0   ;;  %s1561_s22 = smov (!%p166_p2), 126   ;;  %vm236_vm1 = vcmask (!%p166_p2), 1039360   ;;  %vm249_vm2 = vcmask (!%p166_p2), 1041408  }
   0x7   : > { %v1604_v4 = vshrl.u32 (!%p166_p2), %v218_v0, 7  ;;  %290 = vmatprep.mubr.bf16.mxu0 (!%p166_p2), %v1559_v7  ;;  %s1562_s23 = smov (!%p166_p2), 110   ;;  %s1563_s24 = smov (!%p166_p2), 109   ;;  %v1348_v20 = vld [vmem:[%s1736_s1 + $0x4] sm:$0xf] (!%p166_p2)  ;;  %vm245_vm3 = vcmask (!%p166_p2), 31744  }
   0x8   : > { %v217_v5 = vunpack.c.0.s8 (!%p166_p2), %v216_v2  ;;  %s1564_s25 = smov (!%p166_p2), 108   ;;  %s1565_s26 = smov (!%p166_p2), 92   ;;  %vm438_vm4 = vcmask (!%p166_p2), 1031168   ;;  %v212_v31 = vld [vmem:[%s1736_s1] sm:$0xf] (!%p166_p2)  ;;  %vm548_vm5 = vcmask (!%p166_p2), 900096  }
   0x9   : > { %s1566_s27 = smov (!%p166_p2), 91   ;;  %s1567_s28 = smov (!%p166_p2), 90   ;;  %v1355_v40 = vld [vmem:[%s1736_s1 + $0x8] sm:$0xf] (!%p166_p2)  ;;  %vm658_vm6 = vcmask (!%p166_p2), 891904   ;;  %vm768_vm7 = vcmask (!%p166_p2), 883712  }
   0xa   : > { %v220_v6 = vsub.s32 (!%p166_p2), %v217_v5, %v1604_v4  ;;  %v1359_v49 = vld [vmem:[%s1736_s1 + $0xc] sm:$0xf] (!%p166_p2)  ;;  %v1363_v58 = vld [vmem:[%s1736_s1 + $0x10] sm:$0xf] (!%p166_p2)  ;;  %vm878_vm8 = vcmask (!%p166_p2), 752640   ;;  %vm988_vm9 = vcmask (!%p166_p2), 744448  }
   0xb   : > { %v1367_v5 = vld [vmem:[%s1736_s1 + $0x14] sm:$0xf] (!%p166_p2)  ;;  %vm1098_vm10 = vcmask (!%p166_p2), 736256   ;;  %vm1250_vm11 = vcmask (!%p166_p2), 7168   ;;  %vm1252_vm12 = vcmask (!%p166_p2), 15360  }
   0xd   : > { %s1741_s16 = smov (!%p195_p3, %s1340_s16), 1 }
   0xe   : > { %s1525_s17 = smul.u32 6, %s1741_s16  ;;  %s1347_s29 = sshll.u32 %s1741_s16, 3 }
   0xf   : > { %s208_s6 = scalar_lea.vmem %s1739_s4, %s1347_s29 }
  0x10   : > { %s199_s20 = scalar_lea.vmem %s1735_s0, %s1525_s17 }
  0x11   : > { %v210_v8 = vld [vmem:[%s199_s20] sm:$0x3f] }
  0x12   : > { %v221_v9 = vrot.slane %v210_v8, %v220_v6  ;;  %v214_v10 = vcombine.high %v210_v8, %v210_v8 }
  0x14   : > { %230 = vrot.lane.b32.xlu0 %v221_v9, %s1560_s21  ;;  %v228_v11 = vrot.slane %v214_v10, %v220_v6  ;;  %v229_v12 = vcombine.high %v221_v9, %v221_v9  ;;  %v343_v24 = vsel %vm249_vm2, %v221_v9, 0 }
  0x16   : > { %234 = vrot.lane.b32.xlu1 %v228_v11, %s1560_s21  ;;  %v349_v23 = vsel %vm249_vm2, %v228_v11, 0 }
  0x18   : > { %232 = vrot.lane.b32.xlu0 %v229_v12, %s1560_s21 }
  0x1a   : > { %432 = vrot.lane.b32.xlu1 %v221_v9, %s1561_s22 }
  0x1c   : > { %434 = vrot.lane.b32.xlu0 %v229_v12, %s1561_s22 }
  0x1e   : > { %436 = vrot.lane.b32.xlu1 %v228_v11, %s1561_s22 }
  0x20   : > { %542 = vrot.lane.b32.xlu0 %v221_v9, %s1562_s23 }
  0x22   : > { %544 = vrot.lane.b32.xlu1 %v229_v12, %s1562_s23 }
  0x24   : > { %546 = vrot.lane.b32.xlu0 %v228_v11, %s1562_s23  ;;  %s1526_s23 = smul.u32 12, %s1741_s16 }
  0x26   : > { %652 = vrot.lane.b32.xlu1 %v221_v9, %s1563_s24 }
  0x28   : > { %654 = vrot.lane.b32.xlu0 %v229_v12, %s1563_s24 }
  0x2a   : > { %656 = vrot.lane.b32.xlu1 %v228_v11, %s1563_s24 }
  0x2c   : > { %762 = vrot.lane.b32.xlu0 %v221_v9, %s1564_s25 }
  0x2e   : > { %764 = vrot.lane.b32.xlu1 %v229_v12, %s1564_s25 }
  0x30   : > { %766 = vrot.lane.b32.xlu0 %v228_v11, %s1564_s25 }
  0x32   : > { %872 = vrot.lane.b32.xlu1 %v221_v9, %s1565_s26 }
  0x34   : > { %874 = vrot.lane.b32.xlu0 %v229_v12, %s1565_s26 }
  0x36   : > { %876 = vrot.lane.b32.xlu1 %v228_v11, %s1565_s26 }
  0x38   : > { %982 = vrot.lane.b32.xlu0 %v221_v9, %s1566_s27 }
  0x3a   : > { %984 = vrot.lane.b32.xlu1 %v229_v12, %s1566_s27 }
  0x3c   : > { %986 = vrot.lane.b32.xlu0 %v228_v11, %s1566_s27 }
  0x3e   : > { %1092 = vrot.lane.b32.xlu1 %v221_v9, %s1567_s28 }
  0x40   : > { %1094 = vrot.lane.b32.xlu0 %v229_v12, %s1567_s28 }
  0x42   : > { %1096 = vrot.lane.b32.xlu1 %v228_v11, %s1567_s28  ;;  %s204_s28 = scalar_lea.vmem %s1738_s3, %s1526_s23 }
  0x86   : > { %v231_v13 = vpop.permute.xlu0 %230 }
  0x88   : > { %v235_v14 = vpop.permute.xlu1 %234 }
  0x89   : > { %v242_v15 = vsel %vm236_vm1, %v235_v14, %v231_v13 }
  0x8a   : > { %v233_v16 = vpop.permute.xlu0 %232  ;;  %v256_v17 = vsel %vm249_vm2, %v242_v15, 0  ;;  %v1371_v15 = vld [vmem:[%s1736_s1 + $0x18] sm:$0xf] }
  0x8b   : > { %1408 = vmatpush3.bf16.msra.mxu1 %v256_v17  ;;  %v238_v18 = vsel %vm236_vm1, %v233_v16, %v235_v14  ;;  %v237_v19 = vsel %vm236_vm1, %v231_v13, %v233_v16 }
  0x8c   : > { %1349 = vmatprep.subr.msk.bf16.mxu0 %vm249_vm2, %v238_v18  ;;  %v251_v21 = vsel %vm249_vm2, %v237_v19, 0  ;;  %v433_v22 = vpop.permute.xlu1 %432  ;;  %1413 = vmatprep.subr.bf16.mxu1 %v1557_v3 }
  0x8d   : > { %259 = vmatpush1.bf16.msra.mxu0 %v251_v21 }
  0x8e   : > { %1410 = vmatmul.mubr.msk.bf16.vlgmr.msra.gmra.mrb[0].mxu1 %vm245_vm3, %v1348_v20  ;;  %1352 = vmatprep.subr.msk.bf16.mxu0 %vm249_vm2, %v229_v12  ;;  %v435_v25 = vpop.permute.xlu0 %434 }
  0x8f   : > { %1414 = vmatpush3.bf16.msra.mxu1 %v349_v23  ;;  %1415 = vmatprep.mubr.msk.bf16.mxu1 %vm1558_vm0, %v1557_v3  ;;  %v439_v30 = vsel %vm438_vm4, %v433_v22, %v435_v25  ;;  %v1375_v23 = vld [vmem:[%s1736_s1 + $0x1c] sm:$0xf] }
  0x90   : > { %1350 = vmatmul.mubr.msk.bf16.vlgmr.msra.gmra.mrb[0].mxu0 %vm245_vm3, %v1348_v20  ;;  %v437_v26 = vpop.permute.xlu1 %436  ;;  %1419 = vmatprep.subr.bf16.mxu1 %v1557_v3  ;;  %v451_v35 = vsel %vm249_vm2, %v439_v30, 0 }
  0x91   : > { %352 = vmatpush1.bf16.msra.mxu0 %v343_v24  ;;  %v440_v27 = vsel %vm438_vm4, %v435_v25, %v437_v26  ;;  %383 = vmatprep.mubr.bf16.mxu0 %v1559_v7  ;;  %v444_v29 = vsel %vm438_vm4, %v437_v26, %v433_v22  ;;  %v1379_v26 = vld [vmem:[%s1736_s1 + $0x20] sm:$0xf] }
  0x92   : > { %1356 = vmatprep.subr.msk.bf16.mxu0 %vm249_vm2, %v440_v27  ;;  %v543_v28 = vpop.permute.xlu0 %542  ;;  %v456_v32 = vsel %vm249_vm2, %v444_v29, 0  ;;  %v1220_v27 = vsub.s32 0, %v1604_v4  ;;  %v1228_v29 = vsub.s32 2, %v1604_v4 }
  0x94   : > { %v545_v34 = vpop.permute.xlu1 %544 }
  0x95   : > { %v549_v39 = vsel %vm548_vm5, %v543_v28, %v545_v34 }
  0x96   : > { %v547_v33 = vpop.permute.xlu0 %546  ;;  %v561_v44 = vsel %vm249_vm2, %v549_v39, 0 }
  0x97   : > { %v550_v36 = vsel %vm548_vm5, %v545_v34, %v547_v33  ;;  %v554_v38 = vsel %vm548_vm5, %v547_v33, %v543_v28  ;;  %v1224_v28 = vsub.s32 1, %v1604_v4 }
  0x98   : > { %v653_v37 = vpop.permute.xlu1 %652  ;;  %v566_v41 = vsel %vm249_vm2, %v554_v38, 0 }
  0x9a   : > { %1416 = vmatmul.mubr.msk.bf16.vlgmr.msra.gmra.mrb[0].mxu1 %vm245_vm3, %v212_v31  ;;  %v655_v42 = vpop.permute.xlu0 %654 }
  0x9b   : > { %1420 = vmatpush3.bf16.msra.mxu1 %v456_v32  ;;  %1421 = vmatprep.mubr.msk.bf16.mxu1 %vm1558_vm0, %v1557_v3  ;;  %v659_v48 = vsel %vm658_vm6, %v653_v37, %v655_v42 }
  0x9c   : > { %1353 = vmatmul.mubr.msk.bf16.vlgmr.msra.gmra.mrb[0].mxu0 %vm245_vm3, %v212_v31  ;;  %1425 = vmatprep.subr.bf16.mxu1 %v1557_v3  ;;  %v657_v43 = vpop.permute.xlu1 %656  ;;  %v671_v53 = vsel %vm249_vm2, %v659_v48, 0 }
  0x9d   : > { %459 = vmatpush1.bf16.msra.mxu0 %v451_v35  ;;  %490 = vmatprep.mubr.bf16.mxu0 %v1559_v7  ;;  %v660_v45 = vsel %vm658_vm6, %v655_v42, %v657_v43  ;;  %v664_v47 = vsel %vm658_vm6, %v657_v43, %v653_v37 }
  0x9e   : > { %1360 = vmatprep.subr.msk.bf16.mxu0 %vm249_vm2, %v550_v36  ;;  %v763_v46 = vpop.permute.xlu0 %762  ;;  %v676_v50 = vsel %vm249_vm2, %v664_v47, 0 }
  0xa0   : > { %v765_v52 = vpop.permute.xlu1 %764 }
  0xa1   : > { %v769_v57 = vsel %vm768_vm7, %v763_v46, %v765_v52 }
  0xa2   : > { %v767_v51 = vpop.permute.xlu0 %766  ;;  %v781_v62 = vsel %vm249_vm2, %v769_v57, 0 }
  0xa3   : > { %v770_v54 = vsel %vm768_vm7, %v765_v52, %v767_v51  ;;  %v774_v56 = vsel %vm768_vm7, %v767_v51, %v763_v46 }
  0xa4   : > { %v873_v55 = vpop.permute.xlu1 %872  ;;  %v786_v59 = vsel %vm249_vm2, %v774_v56, 0 }
  0xa6   : > { %1422 = vmatmul.mubr.msk.bf16.vlgmr.msra.gmra.mrb[0].mxu1 %vm245_vm3, %v1355_v40  ;;  %v875_v60 = vpop.permute.xlu0 %874 }
  0xa7   : > { %1426 = vmatpush3.bf16.msra.mxu1 %v566_v41  ;;  %1427 = vmatprep.mubr.msk.bf16.mxu1 %vm1558_vm0, %v1557_v3  ;;  %v879_v2 = vsel %vm878_vm8, %v873_v55, %v875_v60 }
  0xa8   : > { %1357 = vmatmul.mubr.msk.bf16.vlgmr.msra.gmra.mrb[0].mxu0 %vm245_vm3, %v1355_v40  ;;  %1431 = vmatprep.subr.bf16.mxu1 %v1557_v3  ;;  %v877_v61 = vpop.permute.xlu1 %876  ;;  %v891_v10 = vsel %vm249_vm2, %v879_v2, 0 }
  0xa9   : > { %569 = vmatpush1.bf16.msra.mxu0 %v561_v44  ;;  %600 = vmatprep.mubr.bf16.mxu0 %v1559_v7  ;;  %v880_v63 = vsel %vm878_vm8, %v875_v60, %v877_v61  ;;  %v884_v1 = vsel %vm878_vm8, %v877_v61, %v873_v55 }
  0xaa   : > { %1364 = vmatprep.subr.msk.bf16.mxu0 %vm249_vm2, %v660_v45  ;;  %v983_v0 = vpop.permute.xlu0 %982  ;;  %v896_v6 = vsel %vm249_vm2, %v884_v1, 0 }
  0xac   : > { %v985_v9 = vpop.permute.xlu1 %984 }
  0xad   : > { %v989_v14 = vsel %vm988_vm9, %v983_v0, %v985_v9 }
  0xae   : > { %v987_v8 = vpop.permute.xlu0 %986  ;;  %v1001_v19 = vsel %vm249_vm2, %v989_v14, 0 }
  0xaf   : > { %v990_v11 = vsel %vm988_vm9, %v985_v9, %v987_v8  ;;  %v994_v13 = vsel %vm988_vm9, %v987_v8, %v983_v0 }
  0xb0   : > { %v1093_v12 = vpop.permute.xlu1 %1092  ;;  %v1006_v16 = vsel %vm249_vm2, %v994_v13, 0 }
  0xb2   : > { %1428 = vmatmul.mubr.msk.bf16.vlgmr.msra.gmra.mrb[0].mxu1 %vm245_vm3, %v1359_v49  ;;  %v1095_v17 = vpop.permute.xlu0 %1094 }
  0xb3   : > { %1432 = vmatpush3.bf16.msra.mxu1 %v676_v50  ;;  %1433 = vmatprep.mubr.msk.bf16.mxu1 %vm1558_vm0, %v1557_v3  ;;  %v1099_v22 = vsel %vm1098_vm10, %v1093_v12, %v1095_v17 }
  0xb4   : > { %1361 = vmatmul.mubr.msk.bf16.vlgmr.msra.gmra.mrb[0].mxu0 %vm245_vm3, %v1359_v49  ;;  %1437 = vmatprep.subr.bf16.mxu1 %v1557_v3  ;;  %v1097_v18 = vpop.permute.xlu1 %1096  ;;  %v1111_v25 = vsel %vm249_vm2, %v1099_v22, 0 }
  0xb5   : > { %679 = vmatpush1.bf16.msra.mxu0 %v671_v53  ;;  %710 = vmatprep.mubr.bf16.mxu0 %v1559_v7  ;;  %v1100_v20 = vsel %vm1098_vm10, %v1095_v17, %v1097_v18  ;;  %v1104_v21 = vsel %vm1098_vm10, %v1097_v18, %v1093_v12 }
  0xb6   : > { %1368 = vmatprep.subr.msk.bf16.mxu0 %vm249_vm2, %v770_v54  ;;  %v1116_v24 = vsel %vm249_vm2, %v1104_v21, 0 }
  0xbe   : > { %1434 = vmatmul.mubr.msk.bf16.vlgmr.msra.gmra.mrb[0].mxu1 %vm245_vm3, %v1363_v58 }
  0xbf   : > { %1438 = vmatpush3.bf16.msra.mxu1 %v786_v59  ;;  %1439 = vmatprep.mubr.msk.bf16.mxu1 %vm1558_vm0, %v1557_v3 }
  0xc0   : > { %1365 = vmatmul.mubr.msk.bf16.vlgmr.msra.gmra.mrb[0].mxu0 %vm245_vm3, %v1363_v58  ;;  %1443 = vmatprep.subr.bf16.mxu1 %v1557_v3 }
  0xc1   : > { %789 = vmatpush1.bf16.msra.mxu0 %v781_v62  ;;  %820 = vmatprep.mubr.bf16.mxu0 %v1559_v7 }
  0xc2   : > { %1372 = vmatprep.subr.msk.bf16.mxu0 %vm249_vm2, %v880_v63 }
  0xca   : > { %1440 = vmatmul.mubr.msk.bf16.vlgmr.msra.gmra.mrb[0].mxu1 %vm245_vm3, %v1367_v5 }
  0xcb   : > { %1444 = vmatpush3.bf16.msra.mxu1 %v896_v6  ;;  %1445 = vmatprep.mubr.msk.bf16.mxu1 %vm1558_vm0, %v1557_v3 }
  0xcc   : > { %1369 = vmatmul.mubr.msk.bf16.vlgmr.msra.gmra.mrb[0].mxu0 %vm245_vm3, %v1367_v5  ;;  %1449 = vmatprep.subr.bf16.mxu1 %v1557_v3 }
  0xcd   : > { %899 = vmatpush1.bf16.msra.mxu0 %v891_v10  ;;  %930 = vmatprep.mubr.bf16.mxu0 %v1559_v7 }
  0xce   : > { %1376 = vmatprep.subr.msk.bf16.mxu0 %vm249_vm2, %v990_v11 }
  0xd6   : > { %1446 = vmatmul.mubr.msk.bf16.vlgmr.msra.gmra.mrb[0].mxu1 %vm245_vm3, %v1371_v15 }
  0xd7   : > { %1450 = vmatpush3.bf16.msra.mxu1 %v1006_v16  ;;  %1451 = vmatprep.mubr.msk.bf16.mxu1 %vm1558_vm0, %v1557_v3 }
  0xd8   : > { %1373 = vmatmul.mubr.msk.bf16.vlgmr.msra.gmra.mrb[0].mxu0 %vm245_vm3, %v1371_v15  ;;  %1455 = vmatprep.subr.bf16.mxu1 %v1557_v3 }
  0xd9   : > { %1009 = vmatpush1.bf16.msra.mxu0 %v1001_v19  ;;  %1040 = vmatprep.mubr.bf16.mxu0 %v1559_v7 }
  0xda   : > { %1380 = vmatprep.subr.msk.bf16.mxu0 %vm249_vm2, %v1100_v20 }
  0xe2   : > { %1452 = vmatmul.mubr.msk.bf16.vlgmr.msra.gmra.mrb[0].mxu1 %vm245_vm3, %v1375_v23 }
  0xe3   : > { %1456 = vmatpush3.bf16.msra.mxu1 %v1116_v24  ;;  %1457 = vmatprep.mubr.msk.bf16.mxu1 %vm1558_vm0, %v1557_v3  ;;  %v211_v3 = vld [vmem:[%s1737_s2] sm:$0x7] }
  0xe4   : > { %1377 = vmatmul.mubr.msk.bf16.vlgmr.msra.gmra.mrb[0].mxu0 %vm245_vm3, %v1375_v23  ;;  %v1225_v31 = vrot.slane %v211_v3, %v1224_v28  ;;  %v1229_v36 = vrot.slane %v211_v3, %v1228_v29 }
  0xe5   : > { %1119 = vmatpush1.bf16.msra.mxu0 %v1111_v25  ;;  %1150 = vmatprep.mubr.bf16.mxu0 %v1559_v7  ;;  %v1221_v7 = vrot.slane %v211_v3, %v1220_v27 }
  0xee   : > { %1458 = vmatmul.mubr.msk.bf16.vlgmr.msra.gmra.mrb[0].mxu1 %vm245_vm3, %v1379_v26 }
  0xf0   : > { %1381 = vmatmul.mubr.msk.bf16.vlgmr.msra.gmra.mrb[0].mxu0 %vm245_vm3, %v1379_v26 }
 0x1c1   : > { %v1193_v30 = vpop.f32.mrb[0].mxu1 }
 0x1c2   : > { %v1388_v32 = vpack.c.bf16 %v1193_v30, %v1193_v30  ;;  %v1459_v33 = vpop.f32.mrb[1].mxu1  ;;  %v1242_v41 = vmul.f32 %v1193_v30, %v1193_v30  ;;  %v1235_v47 = vmul.f32 %v1229_v36, %v1193_v30 }
 0x1c3   : > { %v1152_v34 = vpop.f32.mrb[0].mxu0  ;;  %v1196_v35 = vpop.f32.mrb[2].mxu1 }
 0x1c4   : > { %1216 = vst [vmem:[%s204_s28 + $0x8] sm:$0xf] %v1388_v32  ;;  %v1233_v37 = vmul.f32 %v1221_v7, %v1152_v34  ;;  %v1240_v38 = vmul.f32 %v1152_v34, %v1152_v34  ;;  %v1154_v39 = vpop.f32.mrb[1].mxu0  ;;  %v1460_v40 = vpop.f32.mrb[3].mxu1  ;;  %v1245_v51 = vmul.f32 %v1242_v41, %v1229_v36 }
 0x1c5   : > { %v1387_v42 = vpack.c.bf16 %v1154_v39, %v1152_v34  ;;  %v1234_v4 = vmul.f32 %v1225_v31, %v1154_v39  ;;  %v1241_v43 = vmul.f32 %v1154_v39, %v1154_v39  ;;  %v1156_v44 = vpop.f32.mrb[2].mxu0 }
 0x1c6   : > { %v1157_v45 = vpop.f32.mrb[3].mxu0  ;;  %v1243_v46 = vmul.f32 %v1240_v38, %v1221_v7 }
 0x1c7   : > { %1215 = vst [vmem:[%s204_s28] sm:$0xff] %v1387_v42  ;;  %v1236_v48 = vadd.f32 %v1234_v4, %v1233_v37  ;;  %v1244_v49 = vmul.f32 %v1241_v43, %v1225_v31 }
 0x1c9   : > { %v1237_v50 = vadd.f32 %v1236_v48, %v1235_v47  ;;  %v1246_v52 = vadd.f32 %v1244_v49, %v1243_v46 }
 0x1cb   : > { %1238 = vadd.xlane.f32.xlu0 %v1237_v50  ;;  %v1247_v53 = vadd.f32 %v1246_v52, %v1245_v51 }
 0x1cd   : > { %1248 = vadd.xlane.f32.xlu1 %v1247_v53 }
 0x258   : > { %v1239_v54 = vpop.xlane.xlu0 %1238 }
 0x25a   : > { %v1249_v55 = vpop.xlane.xlu1 %1248 }
 0x25b   : > { %v1251_v56 = vsel %vm1250_vm11, %v1239_v54, %v1249_v55 }
 0x25c   : > { %1253 = vst.msk [vmem:[%s208_s6] sm:$0xff] %vm1252_vm12, %v1251_v56 }
 0x25d PF: > { %s15_s15 = sadd.s32 1, %s1554_s15  }
 0x25e   : > { %p12_p4 = scmp.ge.s32.totalorder %s15_s15, 4  }
 0x260   :  { %14 = sbr.rel (!%p12_p4) target bundleno = 1 (0x1), region = 82 }

</bundles_post_ra>
